<compile_context>
chip_gen: v7x
topology: tpu7x:2x2x1
jax: 0.10.0
libtpu: 0.0.40
codegen_flags: <defaults>
</compile_context>

<pallas_src>
import functools

import jax
import jax.numpy as jnp
from jax import lax
from jax.experimental import pallas as pl
from jax.experimental.pallas import tpu as pltpu


def _round_up(v, m):
    return ((v + m - 1) // m) * m


def _vmem_limit_bytes():
    """Generation-aware VMEM budget: 3/4 of per-core capacity, safe fallback otherwise."""
    try:
        cap = int(pltpu.get_tpu_info().vmem_capacity_bytes)
    except Exception:
        cap = 0
    if cap <= 0:
        return 48 * 1024 * 1024                      # safe on v5e / v6e / v7x
    return max(32 * 1024 * 1024, min((cap * 3) // 4, 128 * 1024 * 1024))


def _default_batch_slices(batch):
    """Split the batch across TensorCores on dual-core chips (v7x); keep it folded elsewhere
    (bigger MXU M-dim per matmul on single-core v5e/v6e)."""
    if batch % 2 != 0:
        return 1
    try:
        kind = jax.devices()[0].device_kind.lower()
    except Exception:
        return 1
    return 2 if ("v7" in kind or "7x" in kind) else 1


def _pick_time_tile(T, H, N, budget_bytes=8 << 20):
    """Largest divisor of T whose [Tt, H, N] tile stays under the byte budget."""
    per_t = H * N * (2 + 4)                          # bf16 read + f32 write per element
    tt = max(1, min(T, budget_bytes // max(per_t, 1)))
    while T % tt:
        tt -= 1
    return tt


# -----------------------------------------------------------------------------
# Pallas kernel 1: fused (time-loop) spherical-Chebyshev ConvLSTM.
# Layout inside the kernel is [channels, vertices] (vertices on lanes).
# Grid = (batch_slices, T); batch slices are "parallel" (megacore), T is "arbitrary".
# -----------------------------------------------------------------------------
def _fused_convlstm_kernel(x_ref, w_ref, b_ref, lap_hbm,
                           hs_ref, hsum_ref, hsq_ref,
                           lap_vmem, dma_sem, z_scr, c_scr, hsum_scr, hsq_scr,
                           *, Bs, H, K, N, XP, Dz):
    t = pl.program_id(1)
    BHs = Bs * H

    @pl.when(t == 0)
    def _start():
        # Kick off the one-time (per core / batch slice) Laplacian DMA first so it overlaps
        # the state zero-init and the x writeback below.
        pltpu.make_async_copy(lap_hbm, lap_vmem, dma_sem).start()
        z_scr[...] = jnp.zeros(z_scr.shape, z_scr.dtype)     # zero h + pad rows exactly once
        c_scr[...] = jnp.zeros(c_scr.shape, c_scr.dtype)
        hsum_scr[...] = jnp.zeros(hsum_scr.shape, hsum_scr.dtype)
        hsq_scr[...] = jnp.zeros(hsq_scr.shape, hsq_scr.dtype)

    # Band 0 of z_scr = [x_t ; h_{t-1} ; pad].  x rows are overwritten every step; h rows were
    # written at the end of the previous step (zeros at t==0); pad rows stay zero.  No per-step
    # concatenate / zeros materialization.
    z_scr[pl.ds(0, XP), :] = x_ref[...]

    @pl.when(t == 0)
    def _wait():
        pltpu.make_async_copy(lap_hbm, lap_vmem, dma_sem).wait()

    lap = lap_vmem[...]                                      # [N, N] bf16 (symmetric)

    # Fused Chebyshev recurrence on Z = concat([x, h]) in transposed layout:
    #   Y_k = 2 * Y_{k-1} @ L - Y_{k-2}     (L symmetric  <=>  T_k(L) applied to Z)
    # Each order writes its own 16-aligned Dz-row band of z_scr; f32 copies of Y_{k-1}/Y_{k-2}
    # are carried in registers (no re-upcasting of bf16 values).
    y_km1_bf = z_scr[pl.ds(0, Dz), :]
    y_km1_f32 = y_km1_bf.astype(jnp.float32) if K >= 3 else None
    y_km2_f32 = None
    for k in range(1, K):
        m = jnp.dot(y_km1_bf, lap, preferred_element_type=jnp.float32)
        yk_f32 = m if k == 1 else 2.0 * m - y_km2_f32
        yk_bf = yk_f32.astype(jnp.bfloat16)
        z_scr[pl.ds(k * Dz, Dz), :] = yk_bf
        y_km2_f32, y_km1_f32, y_km1_bf = y_km1_f32, yk_f32, yk_bf

    # All K orders, x+h parts and all batches of this slice in ONE gate matmul, fed directly
    # from the z_scr scratch.  Gate rows are ordered (gate, batch, unit): i | f | o | g.
    # TODO(synk): for configs with small Dz, hoist the x-part basis T_k(L) @ x_t into a
    # time-parallel pre-pass to raise MXU M-dim utilization of the sequential recurrence.
    gates = jnp.dot(w_ref[...], z_scr[...],
                    preferred_element_type=jnp.float32) + b_ref[...]    # [Dg, N] f32

    def _sigmoid(v):                        # one EUP tanh instead of exp + reciprocal
        return 0.5 * (jnp.tanh(0.5 * v) + 1.0)

    i_g = _sigmoid(gates[0 * BHs:1 * BHs, :])
    f_g = _sigmoid(gates[1 * BHs:2 * BHs, :])
    o_g = _sigmoid(gates[2 * BHs:3 * BHs, :])
    g_g = jnp.tanh(gates[3 * BHs:4 * BHs, :])

    c_next = f_g * c_scr[...] + i_g * g_g                    # [BHs, N] f32
    h_next = o_g * jnp.tanh(c_next)
    c_scr[...] = c_next

    h_bf = h_next.astype(jnp.bfloat16)                       # cast exactly once
    z_scr[pl.ds(XP, BHs), :] = h_bf                          # h input for the next step
    for b in range(Bs):                                      # lane-dense [H, N] stores
        hs_ref[b, :, :] = h_bf[b * H:(b + 1) * H, :]

    # BatchNorm statistics: plain VALU accumulation each step; the 2 cross-lane (XLU)
    # reductions are deferred to a single epilogue at the last time step.
    hsum_scr[...] += h_next
    hsq_scr[...] += h_next * h_next

    @pl.when(t == pl.num_programs(1) - 1)
    def _finalize():
        hsum_ref[...] = jnp.sum(hsum_scr[...], axis=1, keepdims=True)
        hsq_ref[...] = jnp.sum(hsq_scr[...], axis=1, keepdims=True)


# -----------------------------------------------------------------------------
# Pallas kernel 2: BatchNorm (precomputed scale/shift) + ReLU, tiled over (B, T-blocks).
# Also performs the [T,B,H,N] -> [B,T,H,N] layout change via the output index_map.
# -----------------------------------------------------------------------------
def _bn_relu_kernel(h_ref, scale_ref, shift_ref, o_ref):
    xv = h_ref[...].astype(jnp.float32)                      # [Tt, H, N]
    o_ref[...] = jnp.maximum(xv * scale_ref[...] + shift_ref[...], 0.0)


# -----------------------------------------------------------------------------
# Weight packing: block-diagonal-over-(slice-)batch gate weight so one matmul per step does
# everything.  Row layout per Chebyshev band: [x rows (16-aligned pad to XP) | h rows | pad].
# -----------------------------------------------------------------------------
def _pack_gate_weights(wx, wh, bias, Bs, XP, Dz, Dg):
    K, Cin, four_h = wx.shape
    H = four_h // 4
    BHs = Bs * H
    W = jnp.zeros((K * Dz, Dg), jnp.float32)
    for k in range(K):
        r0 = k * Dz
        for b in range(Bs):
            for g in range(4):                               # gate order: i, f, o, g
                col = g * BHs + b * H
                W = W.at[r0 + b * Cin:r0 + (b + 1) * Cin,
                         col:col + H].set(wx[k, :, g * H:(g + 1) * H])
                rh = r0 + XP + b * H
                W = W.at[rh:rh + H, col:col + H].set(wh[k, :, g * H:(g + 1) * H])
    Wt = jnp.transpose(W).astype(jnp.bfloat16)               # [Dg, K*Dz]

    bias = bias.reshape(-1)                                  # [4H]
    bb = jnp.zeros((Dg,), jnp.float32)
    for g in range(4):
        for b in range(Bs):
            bb = bb.at[g * BHs + b * H:g * BHs + (b + 1) * H].set(bias[g * H:(g + 1) * H])
    return Wt, bb.reshape(Dg, 1)


# -----------------------------------------------------------------------------
# Module forward.
# -----------------------------------------------------------------------------
def convlstm_spherical_cheb_bn_pool_forward(x, params, num_batch_slices=None):
    """x: [B, T, Cin, N0] -> [B, T, H, 4*N0] (decoder block: unpool x4, ConvLSTM, BN, ReLU)."""
    B, T, Cin, N0 = x.shape
    UP = 4
    N = UP * N0
    H = params["wh"].shape[1]
    K = params["wx"].shape[0]

    NS = num_batch_slices or _default_batch_slices(B)
    if B % NS != 0:
        NS = 1
    Bs = B // NS
    BCs = Bs * Cin
    BHs = Bs * H
    XP = _round_up(BCs, 16)                                  # bf16 packs 16 rows per vreg
    Dz = _round_up(XP + BHs, 16)
    Dg = _round_up(4 * BHs, 16)

    # TODO(synk): dense resident Laplacian is a stand-in for the sparse Healpix laplacian; for
    # realistic vertex counts stream L in row blocks (pltpu.emit_pipeline) instead of keeping a
    # full (N, N) copy resident (mandatory on v7x's 64 MiB/core VMEM).
    lap_bf16 = params["lap"].astype(jnp.bfloat16)
    Wt, bias_big = _pack_gate_weights(params["wx"], params["wh"], params["bias"],
                                      Bs, XP, Dz, Dg)

    # Factor-4 nearest-neighbour unpool (Healpix NESTED: children of vertex i are columns
    # 4i..4i+3) done in the XLA wrapper, then transpose to the kernel's channel-major layout.
    x_up = jnp.repeat(x, UP, axis=-1)                                    # [B, T, Cin, N]
    xs = x_up.reshape(NS, Bs, T, Cin, N).transpose(0, 2, 1, 3, 4)
    xs = xs.reshape(NS, T, BCs, N)
    if XP > BCs:
        xs = jnp.pad(xs, ((0, 0), (0, 0), (0, XP - BCs), (0, 0)))
    xs = xs.astype(jnp.bfloat16)                                         # [NS, T, XP, N]

    kern = functools.partial(_fused_convlstm_kernel,
                             Bs=Bs, H=H, K=K, N=N, XP=XP, Dz=Dz)
    hs, hsum, hsq = pl.pallas_call(
        kern,
        out_shape=(jax.ShapeDtypeStruct((T, B, H, N), jnp.bfloat16),
                   jax.ShapeDtypeStruct((NS, BHs, 1), jnp.float32),
                   jax.ShapeDtypeStruct((NS, BHs, 1), jnp.float32)),
        grid=(NS, T),
        in_specs=[
            pl.BlockSpec((None, None, XP, N), lambda s, t: (s, t, 0, 0)),  # x_t
            pl.BlockSpec((Dg, K * Dz), lambda s, t: (0, 0)),               # packed gate weights
            pl.BlockSpec((Dg, 1), lambda s, t: (0, 0)),                    # packed gate bias
            pl.BlockSpec(memory_space=pl.ANY),                             # Laplacian stays in HBM
        ],
        out_specs=(
            pl.BlockSpec((None, Bs, H, N), lambda s, t: (t, s, 0, 0)),
            pl.BlockSpec((None, BHs, 1), lambda s, t: (s, 0, 0)),          # BN sum (epilogue write)
            pl.BlockSpec((None, BHs, 1), lambda s, t: (s, 0, 0)),          # BN sumsq
        ),
        scratch_shapes=[
            pltpu.VMEM((N, N), jnp.bfloat16),            # resident Laplacian (one DMA / core)
            pltpu.SemaphoreType.DMA(()),
            pltpu.VMEM((K * Dz, N), jnp.bfloat16),       # z basis: [x ; h ; pad] for all K orders
            pltpu.VMEM((BHs, N), jnp.float32),           # c state
            pltpu.VMEM((BHs, N), jnp.float32),           # BN sum accumulator
            pltpu.VMEM((BHs, N), jnp.float32),           # BN sumsq accumulator
        ],
        compiler_params=pltpu.CompilerParams(
            dimension_semantics=("parallel", "arbitrary"),   # batch slices // cores, T sequential
            vmem_limit_bytes=_vmem_limit_bytes(),
        ),
    )(xs, Wt, bias_big, lap_bf16)

    # Finish BatchNorm statistics (tiny cross-batch reduction) in plain JAX.
    # TODO(synk): training-mode batch statistics only; running_mean/var (eval mode) not tracked.
    count = jnp.float32(B * T * N)
    mean = jnp.sum(hsum.reshape(B, H), axis=0) / count
    ex2 = jnp.sum(hsq.reshape(B, H), axis=0) / count
    var = jnp.maximum(ex2 - mean * mean, 0.0)
    inv = lax.rsqrt(var + 1e-5)
    scale = params["bn_gamma"] * inv
    shift = params["bn_beta"] - mean * scale

    # BN + ReLU: purely HBM-bound elementwise pass; multi-time-step tiles amortize per-grid-step
    # overhead, and the output index_map does the [T,B,H,N] -> [B,T,H,N] relayout for free.
    # (Output kept in f32 for parity with the PyTorch module.)
    Tt = _pick_time_tile(T, H, N)
    out = pl.pallas_call(
        _bn_relu_kernel,
        out_shape=jax.ShapeDtypeStruct((B, T, H, N), jnp.float32),
        grid=(B, T // Tt),
        in_specs=[
            pl.BlockSpec((Tt, None, H, N), lambda b, ti: (ti, b, 0, 0)),
            pl.BlockSpec((H, 1), lambda b, ti: (0, 0)),
            pl.BlockSpec((H, 1), lambda b, ti: (0, 0)),
        ],
        out_specs=pl.BlockSpec((None, Tt, H, N), lambda b, ti: (b, ti, 0, 0)),
        compiler_params=pltpu.CompilerParams(
            dimension_semantics=("parallel", "parallel")),
    )(hs, scale.reshape(H, 1), shift.reshape(H, 1))
    return out


def init_params(key, in_channels, out_channels, n_vertices, kernel_size):
    kl, kx, kh, kb = jax.random.split(key, 4)
    # Synthetic symmetric, rescaled graph Laplacian (stands in for the sparse Healpix lap).
    a = jax.random.uniform(kl, (n_vertices, n_vertices))
    a = (a + a.T) * 0.5
    a = jnp.where(a > 0.8, a, 0.0)
    deg = jnp.sum(a, axis=1)
    lap = jnp.diag(deg) - a
    lap = 2.0 * lap / (jnp.max(deg) + 1e-6) - jnp.eye(n_vertices)
    std = (2.0 / (kernel_size * (in_channels + out_channels))) ** 0.5
    wx = std * jax.random.normal(kx, (kernel_size, in_channels, 4 * out_channels))
    wh = std * jax.random.normal(kh, (kernel_size, out_channels, 4 * out_channels))
    bias = 0.01 * jax.random.normal(kb, (4 * out_channels,))
    return dict(
        lap=lap.astype(jnp.float32),
        wx=wx.astype(jnp.float32),
        wh=wh.astype(jnp.float32),
        bias=bias.astype(jnp.float32),
        bn_gamma=jnp.ones((out_channels,), jnp.float32),
        bn_beta=jnp.zeros((out_channels,), jnp.float32),
    )


if __name__ == "__main__":
    B, T, Cin, N0 = 2, 8, 4, 16        # input: [batch, time, channels, vertices]
    H, K = 32, 3                        # out_channels (hidden dim), Chebyshev degree
    key = jax.random.PRNGKey(0)
    kp, kd = jax.random.split(key)
    params = init_params(kp, Cin, H, 4 * N0, K)
    x = jax.random.normal(kd, (B, T, Cin, N0), jnp.float32)

    fwd = jax.jit(lambda v: convlstm_spherical_cheb_bn_pool_forward(v, params))
    out = jax.block_until_ready(fwd(x))
    assert out.shape == (B, T, H, 4 * N0), out.shape
    assert bool(jnp.all(jnp.isfinite(out)))
    assert bool(jnp.all(out >= 0.0))   # ReLU output
    print("KERNEL_OK")
</pallas_src>

<mosaic_0001>
module attributes {stable_mosaic.version = 11 : i64} {
  func.func @_fused_convlstm_kernel(%arg0: i32, %arg1: i32, %arg2: memref<1x1x16x64xbf16, #tpu.memory_space<vmem>>, %arg3: memref<256x240xbf16, #tpu.memory_space<vmem>>, %arg4: memref<256x1xf32, #tpu.memory_space<vmem>>, %arg5: memref<64x64xbf16, #tpu.memory_space<any>>, %arg6: memref<1x2x32x64xbf16, #tpu.memory_space<vmem>>, %arg7: memref<1x64x1xf32, #tpu.memory_space<vmem>>, %arg8: memref<1x64x1xf32, #tpu.memory_space<vmem>>, %arg9: memref<64x64xbf16, #tpu.memory_space<vmem>>, %arg10: memref<!tpu.dma_semaphore, #tpu.memory_space<semaphore_mem>>, %arg11: memref<240x64xbf16, #tpu.memory_space<vmem>>, %arg12: memref<64x64xf32, #tpu.memory_space<vmem>>, %arg13: memref<64x64xf32, #tpu.memory_space<vmem>>, %arg14: memref<64x64xf32, #tpu.memory_space<vmem>>) attributes {dimension_semantics = [#tpu.dimension_semantics<parallel>, #tpu.dimension_semantics<arbitrary>], iteration_bounds = array<i64: 1, 8>, scalar_prefetch = 0 : i64, scratch_operands = 6 : i64, tpu.core_type = #tpu.core_type<tc>, window_params = [{transform_indices = @transform_0, window_bounds = array<i64: 1, 1, 16, 64>}, {pipeline_mode = #tpu.pipeline_mode<synchronous>, transform_indices = @transform_1, window_bounds = array<i64: 256, 240>}, {pipeline_mode = #tpu.pipeline_mode<synchronous>, transform_indices = @transform_2, window_bounds = array<i64: 256, 1>}, {}, {transform_indices = @transform_4, window_bounds = array<i64: 1, 2, 32, 64>}, {transform_indices = @transform_5, window_bounds = array<i64: 1, 64, 1>}, {transform_indices = @transform_6, window_bounds = array<i64: 1, 64, 1>}]} {
    %c0_i32 = arith.constant 0 : i32
    %0 = arith.cmpi eq, %arg1, %c0_i32 : i32
    %1 = arith.extui %0 : i1 to i32
    %c0_i32_0 = arith.constant 0 : i32
    %2 = arith.cmpi ne, %1, %c0_i32_0 : i32
    scf.if %2 {
      tpu.enqueue_dma source(%arg5 : memref<64x64xbf16, #tpu.memory_space<any>>) target(%arg9 : memref<64x64xbf16, #tpu.memory_space<vmem>>) target_semaphore(%arg10 : memref<!tpu.dma_semaphore, #tpu.memory_space<semaphore_mem>>)
      %cst_53 = arith.constant 0.000000e+00 : bf16
      %80 = vector.broadcast %cst_53 : bf16 to vector<240x64xbf16>
      %c0_54 = arith.constant 0 : index
      %c0_55 = arith.constant 0 : index
      %81 = vector.load %arg11[%c0_54, %c0_55] : memref<240x64xbf16, #tpu.memory_space<vmem>>, vector<240x64xbf16>
      tpu.vector_store %arg11[%c0_54, %c0_55], %80 {strides = array<i32>} : memref<240x64xbf16, #tpu.memory_space<vmem>>, vector<240x64xbf16>,
      %cst_56 = arith.constant 0.000000e+00 : f32
      %82 = vector.broadcast %cst_56 : f32 to vector<64x64xf32>
      %c0_57 = arith.constant 0 : index
      %c0_58 = arith.constant 0 : index
      %83 = vector.load %arg12[%c0_57, %c0_58] : memref<64x64xf32, #tpu.memory_space<vmem>>, vector<64x64xf32>
      tpu.vector_store %arg12[%c0_57, %c0_58], %82 {strides = array<i32>} : memref<64x64xf32, #tpu.memory_space<vmem>>, vector<64x64xf32>,
      %cst_59 = arith.constant 0.000000e+00 : f32
      %84 = vector.broadcast %cst_59 : f32 to vector<64x64xf32>
      %c0_60 = arith.constant 0 : index
      %c0_61 = arith.constant 0 : index
      %85 = vector.load %arg13[%c0_60, %c0_61] : memref<64x64xf32, #tpu.memory_space<vmem>>, vector<64x64xf32>
      tpu.vector_store %arg13[%c0_60, %c0_61], %84 {strides = array<i32>} : memref<64x64xf32, #tpu.memory_space<vmem>>, vector<64x64xf32>,
      %cst_62 = arith.constant 0.000000e+00 : f32
      %86 = vector.broadcast %cst_62 : f32 to vector<64x64xf32>
      %c0_63 = arith.constant 0 : index
      %c0_64 = arith.constant 0 : index
      %87 = vector.load %arg14[%c0_63, %c0_64] : memref<64x64xf32, #tpu.memory_space<vmem>>, vector<64x64xf32>
      tpu.vector_store %arg14[%c0_63, %c0_64], %86 {strides = array<i32>} : memref<64x64xf32, #tpu.memory_space<vmem>>, vector<64x64xf32>,
    } else {
    }
    %c0 = arith.constant 0 : index
    %c0_1 = arith.constant 0 : index
    %c0_2 = arith.constant 0 : index
    %c0_3 = arith.constant 0 : index
    %3 = vector.load %arg2[%c0, %c0_1, %c0_2, %c0_3] : memref<1x1x16x64xbf16, #tpu.memory_space<vmem>>, vector<1x1x16x64xbf16>
    %4 = vector.shape_cast %3 : vector<1x1x16x64xbf16> to vector<16x64xbf16>
    %c0_4 = arith.constant 0 : index
    %c0_5 = arith.constant 0 : index
    %5 = vector.load %arg11[%c0_4, %c0_5] : memref<240x64xbf16, #tpu.memory_space<vmem>>, vector<16x64xbf16>
    tpu.vector_store %arg11[%c0_4, %c0_5], %4 {strides = array<i32>} : memref<240x64xbf16, #tpu.memory_space<vmem>>, vector<16x64xbf16>,
    %c0_i32_6 = arith.constant 0 : i32
    %6 = arith.cmpi eq, %arg1, %c0_i32_6 : i32
    %7 = arith.extui %6 : i1 to i32
    %c0_i32_7 = arith.constant 0 : i32
    %8 = arith.cmpi ne, %7, %c0_i32_7 : i32
    scf.if %8 {
      tpu.wait_dma2 semaphore(%arg10 : memref<!tpu.dma_semaphore, #tpu.memory_space<semaphore_mem>>) src(%arg5 : memref<64x64xbf16, #tpu.memory_space<any>>) dst(%arg9 : memref<64x64xbf16, #tpu.memory_space<vmem>>)
    } else {
    }
    %c0_8 = arith.constant 0 : index
    %c0_9 = arith.constant 0 : index
    %9 = vector.load %arg9[%c0_8, %c0_9] : memref<64x64xbf16, #tpu.memory_space<vmem>>, vector<64x64xbf16>
    %c0_10 = arith.constant 0 : index
    %c0_11 = arith.constant 0 : index
    %10 = vector.load %arg11[%c0_10, %c0_11] : memref<240x64xbf16, #tpu.memory_space<vmem>>, vector<80x64xbf16>
    %11 = arith.extf %10 : vector<80x64xbf16> to vector<80x64xf32>
    %cst = arith.constant dense<0.000000e+00> : vector<80x64xf32>
    %12 = tpu.matmul %10, %9, %cst {dimension_numbers = #tpu.dot_dimension_numbers<[1], [0], [0], [1], [0, 0, 1, 1], [], []>} : vector<80x64xbf16>, vector<64x64xbf16>, vector<80x64xf32> -> vector<80x64xf32>
    %13 = arith.truncf %12 : vector<80x64xf32> to vector<80x64xbf16>
    %c80 = arith.constant 80 : index
    %c0_12 = arith.constant 0 : index
    %14 = vector.load %arg11[%c80, %c0_12] : memref<240x64xbf16, #tpu.memory_space<vmem>>, vector<80x64xbf16>
    tpu.vector_store %arg11[%c80, %c0_12], %13 {strides = array<i32>} : memref<240x64xbf16, #tpu.memory_space<vmem>>, vector<80x64xbf16>,
    %cst_13 = arith.constant dense<0.000000e+00> : vector<80x64xf32>
    %15 = tpu.matmul %13, %9, %cst_13 {dimension_numbers = #tpu.dot_dimension_numbers<[1], [0], [0], [1], [0, 0, 1, 1], [], []>} : vector<80x64xbf16>, vector<64x64xbf16>, vector<80x64xf32> -> vector<80x64xf32>
    %cst_14 = arith.constant 2.000000e+00 : f32
    %16 = vector.broadcast %cst_14 : f32 to vector<80x64xf32>
    %17 = arith.mulf %16, %15 : vector<80x64xf32>
    %18 = arith.subf %17, %11 : vector<80x64xf32>
    %19 = arith.truncf %18 : vector<80x64xf32> to vector<80x64xbf16>
    %c160 = arith.constant 160 : index
    %c0_15 = arith.constant 0 : index
    %20 = vector.load %arg11[%c160, %c0_15] : memref<240x64xbf16, #tpu.memory_space<vmem>>, vector<80x64xbf16>
    tpu.vector_store %arg11[%c160, %c0_15], %19 {strides = array<i32>} : memref<240x64xbf16, #tpu.memory_space<vmem>>, vector<80x64xbf16>,
    %c0_16 = arith.constant 0 : index
    %c0_17 = arith.constant 0 : index
    %21 = vector.load %arg3[%c0_16, %c0_17] : memref<256x240xbf16, #tpu.memory_space<vmem>>, vector<256x240xbf16>
    %c0_18 = arith.constant 0 : index
    %c0_19 = arith.constant 0 : index
    %22 = vector.load %arg11[%c0_18, %c0_19] : memref<240x64xbf16, #tpu.memory_space<vmem>>, vector<240x64xbf16>
    %cst_20 = arith.constant dense<0.000000e+00> : vector<256x64xf32>
    %23 = tpu.matmul %21, %22, %cst_20 {dimension_numbers = #tpu.dot_dimension_numbers<[1], [0], [0], [1], [0, 0, 1, 1], [], []>} : vector<256x240xbf16>, vector<240x64xbf16>, vector<256x64xf32> -> vector<256x64xf32>
    %c0_21 = arith.constant 0 : index
    %c0_22 = arith.constant 0 : index
    %24 = vector.load %arg4[%c0_21, %c0_22] : memref<256x1xf32, #tpu.memory_space<vmem>>, vector<256x1xf32>
    %25 = vector.broadcast %24 : vector<256x1xf32> to vector<256x64xf32>
    %26 = arith.addf %23, %25 : vector<256x64xf32>
    %27 = vector.extract_strided_slice %26 {offsets = [0, 0], sizes = [64, 64], strides = [1, 1]} : vector<256x64xf32> to vector<64x64xf32>
    %cst_23 = arith.constant 5.000000e-01 : f32
    %28 = vector.broadcast %cst_23 : f32 to vector<64x64xf32>
    %29 = arith.mulf %28, %27 : vector<64x64xf32>
    %30 = math.tanh %29 : vector<64x64xf32>
    %cst_24 = arith.constant 1.000000e+00 : f32
    %31 = vector.broadcast %cst_24 : f32 to vector<64x64xf32>
    %32 = arith.addf %30, %31 : vector<64x64xf32>
    %cst_25 = arith.constant 5.000000e-01 : f32
    %33 = vector.broadcast %cst_25 : f32 to vector<64x64xf32>
    %34 = arith.mulf %33, %32 : vector<64x64xf32>
    %35 = vector.extract_strided_slice %26 {offsets = [64, 0], sizes = [64, 64], strides = [1, 1]} : vector<256x64xf32> to vector<64x64xf32>
    %cst_26 = arith.constant 5.000000e-01 : f32
    %36 = vector.broadcast %cst_26 : f32 to vector<64x64xf32>
    %37 = arith.mulf %36, %35 : vector<64x64xf32>
    %38 = math.tanh %37 : vector<64x64xf32>
    %cst_27 = arith.constant 1.000000e+00 : f32
    %39 = vector.broadcast %cst_27 : f32 to vector<64x64xf32>
    %40 = arith.addf %38, %39 : vector<64x64xf32>
    %cst_28 = arith.constant 5.000000e-01 : f32
    %41 = vector.broadcast %cst_28 : f32 to vector<64x64xf32>
    %42 = arith.mulf %41, %40 : vector<64x64xf32>
    %43 = vector.extract_strided_slice %26 {offsets = [128, 0], sizes = [64, 64], strides = [1, 1]} : vector<256x64xf32> to vector<64x64xf32>
    %cst_29 = arith.constant 5.000000e-01 : f32
    %44 = vector.broadcast %cst_29 : f32 to vector<64x64xf32>
    %45 = arith.mulf %44, %43 : vector<64x64xf32>
    %46 = math.tanh %45 : vector<64x64xf32>
    %cst_30 = arith.constant 1.000000e+00 : f32
    %47 = vector.broadcast %cst_30 : f32 to vector<64x64xf32>
    %48 = arith.addf %46, %47 : vector<64x64xf32>
    %cst_31 = arith.constant 5.000000e-01 : f32
    %49 = vector.broadcast %cst_31 : f32 to vector<64x64xf32>
    %50 = arith.mulf %49, %48 : vector<64x64xf32>
    %51 = vector.extract_strided_slice %26 {offsets = [192, 0], sizes = [64, 64], strides = [1, 1]} : vector<256x64xf32> to vector<64x64xf32>
    %52 = math.tanh %51 : vector<64x64xf32>
    %c0_32 = arith.constant 0 : index
    %c0_33 = arith.constant 0 : index
    %53 = vector.load %arg12[%c0_32, %c0_33] : memref<64x64xf32, #tpu.memory_space<vmem>>, vector<64x64xf32>
    %54 = arith.mulf %42, %53 : vector<64x64xf32>
    %55 = arith.mulf %34, %52 : vector<64x64xf32>
    %56 = arith.addf %54, %55 : vector<64x64xf32>
    %57 = math.tanh %56 : vector<64x64xf32>
    %58 = arith.mulf %50, %57 : vector<64x64xf32>
    %c0_34 = arith.constant 0 : index
    %c0_35 = arith.constant 0 : index
    %59 = vector.load %arg12[%c0_34, %c0_35] : memref<64x64xf32, #tpu.memory_space<vmem>>, vector<64x64xf32>
    tpu.vector_store %arg12[%c0_34, %c0_35], %56 {strides = array<i32>} : memref<64x64xf32, #tpu.memory_space<vmem>>, vector<64x64xf32>,
    %60 = arith.truncf %58 : vector<64x64xf32> to vector<64x64xbf16>
    %c16 = arith.constant 16 : index
    %c0_36 = arith.constant 0 : index
    %61 = vector.load %arg11[%c16, %c0_36] : memref<240x64xbf16, #tpu.memory_space<vmem>>, vector<64x64xbf16>
    tpu.vector_store %arg11[%c16, %c0_36], %60 {strides = array<i32>} : memref<240x64xbf16, #tpu.memory_space<vmem>>, vector<64x64xbf16>,
    %62 = vector.extract_strided_slice %60 {offsets = [0, 0], sizes = [32, 64], strides = [1, 1]} : vector<64x64xbf16> to vector<32x64xbf16>
    %c0_37 = arith.constant 0 : index
    %c0_38 = arith.constant 0 : index
    %c0_39 = arith.constant 0 : index
    %c0_40 = arith.constant 0 : index
    %63 = vector.load %arg6[%c0_37, %c0_38, %c0_39, %c0_40] : memref<1x2x32x64xbf16, #tpu.memory_space<vmem>>, vector<1x1x32x64xbf16>
    %64 = vector.shape_cast %63 : vector<1x1x32x64xbf16> to vector<32x64xbf16>
    %65 = vector.shape_cast %62 : vector<32x64xbf16> to vector<1x1x32x64xbf16>
    tpu.vector_store %arg6[%c0_37, %c0_38, %c0_39, %c0_40], %65 {strides = array<i32>} : memref<1x2x32x64xbf16, #tpu.memory_space<vmem>>, vector<1x1x32x64xbf16>,
    %66 = vector.extract_strided_slice %60 {offsets = [32, 0], sizes = [32, 64], strides = [1, 1]} : vector<64x64xbf16> to vector<32x64xbf16>
    %c0_41 = arith.constant 0 : index
    %c1 = arith.constant 1 : index
    %c0_42 = arith.constant 0 : index
    %c0_43 = arith.constant 0 : index
    %67 = vector.load %arg6[%c0_41, %c1, %c0_42, %c0_43] : memref<1x2x32x64xbf16, #tpu.memory_space<vmem>>, vector<1x1x32x64xbf16>
    %68 = vector.shape_cast %67 : vector<1x1x32x64xbf16> to vector<32x64xbf16>
    %69 = vector.shape_cast %66 : vector<32x64xbf16> to vector<1x1x32x64xbf16>
    tpu.vector_store %arg6[%c0_41, %c1, %c0_42, %c0_43], %69 {strides = array<i32>} : memref<1x2x32x64xbf16, #tpu.memory_space<vmem>>, vector<1x1x32x64xbf16>,
    %c0_44 = arith.constant 0 : index
    %c0_45 = arith.constant 0 : index
    %70 = vector.load %arg13[%c0_44, %c0_45] : memref<64x64xf32, #tpu.memory_space<vmem>>, vector<64x64xf32>
    %71 = arith.addf %70, %58 : vector<64x64xf32>
    %c0_46 = arith.constant 0 : index
    %c0_47 = arith.constant 0 : index
    %72 = vector.load %arg13[%c0_46, %c0_47] : memref<64x64xf32, #tpu.memory_space<vmem>>, vector<64x64xf32>
    tpu.vector_store %arg13[%c0_46, %c0_47], %71 {strides = array<i32>} : memref<64x64xf32, #tpu.memory_space<vmem>>, vector<64x64xf32>,
    %c0_48 = arith.constant 0 : index
    %c0_49 = arith.constant 0 : index
    %73 = vector.load %arg14[%c0_48, %c0_49] : memref<64x64xf32, #tpu.memory_space<vmem>>, vector<64x64xf32>
    %74 = arith.mulf %58, %58 : vector<64x64xf32>
    %75 = arith.addf %73, %74 : vector<64x64xf32>
    %c0_50 = arith.constant 0 : index
    %c0_51 = arith.constant 0 : index
    %76 = vector.load %arg14[%c0_50, %c0_51] : memref<64x64xf32, #tpu.memory_space<vmem>>, vector<64x64xf32>
    tpu.vector_store %arg14[%c0_50, %c0_51], %75 {strides = array<i32>} : memref<64x64xf32, #tpu.memory_space<vmem>>, vector<64x64xf32>,
    %c7_i32 = arith.constant 7 : i32
    %77 = arith.cmpi eq, %arg1, %c7_i32 : i32
    %78 = arith.extui %77 : i1 to i32
    %c0_i32_52 = arith.constant 0 : i32
    %79 = arith.cmpi ne, %78, %c0_i32_52 : i32
    scf.if %79 {
      %c0_53 = arith.constant 0 : index
      %c0_54 = arith.constant 0 : index
      %80 = vector.load %arg13[%c0_53, %c0_54] : memref<64x64xf32, #tpu.memory_space<vmem>>, vector<64x64xf32>
      %cst_55 = arith.constant dense<0.000000e+00> : vector<64xf32>
      %81 = vector.multi_reduction <add>, %80, %cst_55 [1] : vector<64x64xf32> to vector<64xf32>
      %82 = vector.shape_cast %81 : vector<64xf32> to vector<64x1xf32>
      %c0_56 = arith.constant 0 : index
      %c0_57 = arith.constant 0 : index
      %c0_58 = arith.constant 0 : index
      %83 = vector.load %arg7[%c0_56, %c0_57, %c0_58] : memref<1x64x1xf32, #tpu.memory_space<vmem>>, vector<1x64x1xf32>
      %84 = vector.shape_cast %83 : vector<1x64x1xf32> to vector<64x1xf32>
      %85 = vector.shape_cast %82 : vector<64x1xf32> to vector<1x64x1xf32>
      tpu.vector_store %arg7[%c0_56, %c0_57, %c0_58], %85 {strides = array<i32>} : memref<1x64x1xf32, #tpu.memory_space<vmem>>, vector<1x64x1xf32>,
      %c0_59 = arith.constant 0 : index
      %c0_60 = arith.constant 0 : index
      %86 = vector.load %arg14[%c0_59, %c0_60] : memref<64x64xf32, #tpu.memory_space<vmem>>, vector<64x64xf32>
      %cst_61 = arith.constant dense<0.000000e+00> : vector<64xf32>
      %87 = vector.multi_reduction <add>, %86, %cst_61 [1] : vector<64x64xf32> to vector<64xf32>
      %88 = vector.shape_cast %87 : vector<64xf32> to vector<64x1xf32>
      %c0_62 = arith.constant 0 : index
      %c0_63 = arith.constant 0 : index
      %c0_64 = arith.constant 0 : index
      %89 = vector.load %arg8[%c0_62, %c0_63, %c0_64] : memref<1x64x1xf32, #tpu.memory_space<vmem>>, vector<1x64x1xf32>
      %90 = vector.shape_cast %89 : vector<1x64x1xf32> to vector<64x1xf32>
      %91 = vector.shape_cast %88 : vector<64x1xf32> to vector<1x64x1xf32>
      tpu.vector_store %arg8[%c0_62, %c0_63, %c0_64], %91 {strides = array<i32>} : memref<1x64x1xf32, #tpu.memory_space<vmem>>, vector<1x64x1xf32>,
    } else {
    }
    return
  }
  func.func @transform_0(%arg0: i32, %arg1: i32) -> (i32, i32, i32, i32) {
    %c0_i32 = arith.constant 0 : i32
    %c0_i32_0 = arith.constant 0 : i32
    %c0_i32_1 = arith.constant 0 : i32
    return %arg0, %arg1, %c0_i32, %c0_i32_0 : i32, i32, i32, i32
  }
  func.func @transform_1(%arg0: i32, %arg1: i32) -> (i32, i32) {
    %c0_i32 = arith.constant 0 : i32
    %c0_i32_0 = arith.constant 0 : i32
    %c0_i32_1 = arith.constant 0 : i32
    return %c0_i32, %c0_i32_0 : i32, i32
  }
  func.func @transform_2(%arg0: i32, %arg1: i32) -> (i32, i32) {
    %c0_i32 = arith.constant 0 : i32
    %c0_i32_0 = arith.constant 0 : i32
    %c0_i32_1 = arith.constant 0 : i32
    return %c0_i32, %c0_i32_0 : i32, i32
  }
  func.func @transform_4(%arg0: i32, %arg1: i32) -> (i32, i32, i32, i32) {
    %c0_i32 = arith.constant 0 : i32
    %c0_i32_0 = arith.constant 0 : i32
    %c0_i32_1 = arith.constant 0 : i32
    return %arg1, %arg0, %c0_i32, %c0_i32_0 : i32, i32, i32, i32
  }
  func.func @transform_5(%arg0: i32, %arg1: i32) -> (i32, i32, i32) {
    %c0_i32 = arith.constant 0 : i32
    %c0_i32_0 = arith.constant 0 : i32
    %c0_i32_1 = arith.constant 0 : i32
    return %arg0, %c0_i32, %c0_i32_0 : i32, i32, i32
  }
  func.func @transform_6(%arg0: i32, %arg1: i32) -> (i32, i32, i32) {
    %c0_i32 = arith.constant 0 : i32
    %c0_i32_0 = arith.constant 0 : i32
    %c0_i32_1 = arith.constant 0 : i32
    return %arg0, %c0_i32, %c0_i32_0 : i32, i32, i32
  }
}

module attributes {stable_mosaic.version = 11 : i64} {
  func.func @_bn_relu_kernel(%arg0: i32, %arg1: i32, %arg2: memref<8x1x32x64xbf16, #tpu.memory_space<vmem>>, %arg3: memref<32x1xf32, #tpu.memory_space<vmem>>, %arg4: memref<32x1xf32, #tpu.memory_space<vmem>>, %arg5: memref<1x8x32x64xf32, #tpu.memory_space<vmem>>) attributes {dimension_semantics = [#tpu.dimension_semantics<parallel>, #tpu.dimension_semantics<parallel>], iteration_bounds = array<i64: 2, 1>, scalar_prefetch = 0 : i64, scratch_operands = 0 : i64, tpu.core_type = #tpu.core_type<tc>, window_params = [{transform_indices = @transform_0, window_bounds = array<i64: 8, 1, 32, 64>}, {pipeline_mode = #tpu.pipeline_mode<synchronous>, transform_indices = @transform_1, window_bounds = array<i64: 32, 1>}, {pipeline_mode = #tpu.pipeline_mode<synchronous>, transform_indices = @transform_2, window_bounds = array<i64: 32, 1>}, {transform_indices = @transform_3, window_bounds = array<i64: 1, 8, 32, 64>}]} {
    %c0 = arith.constant 0 : index
    %c0_0 = arith.constant 0 : index
    %c0_1 = arith.constant 0 : index
    %c0_2 = arith.constant 0 : index
    %0 = vector.load %arg2[%c0, %c0_0, %c0_1, %c0_2] : memref<8x1x32x64xbf16, #tpu.memory_space<vmem>>, vector<8x1x32x64xbf16>
    %1 = vector.shape_cast %0 : vector<8x1x32x64xbf16> to vector<8x32x64xbf16>
    %2 = arith.extf %1 : vector<8x32x64xbf16> to vector<8x32x64xf32>
    %c0_3 = arith.constant 0 : index
    %c0_4 = arith.constant 0 : index
    %3 = vector.load %arg3[%c0_3, %c0_4] : memref<32x1xf32, #tpu.memory_space<vmem>>, vector<32x1xf32>
    %4 = vector.shape_cast %3 : vector<32x1xf32> to vector<1x32x1xf32>
    %5 = vector.broadcast %4 : vector<1x32x1xf32> to vector<8x32x64xf32>
    %6 = arith.mulf %2, %5 : vector<8x32x64xf32>
    %c0_5 = arith.constant 0 : index
    %c0_6 = arith.constant 0 : index
    %7 = vector.load %arg4[%c0_5, %c0_6] : memref<32x1xf32, #tpu.memory_space<vmem>>, vector<32x1xf32>
    %8 = vector.shape_cast %7 : vector<32x1xf32> to vector<1x32x1xf32>
    %9 = vector.broadcast %8 : vector<1x32x1xf32> to vector<8x32x64xf32>
    %10 = arith.addf %6, %9 : vector<8x32x64xf32>
    %cst = arith.constant 0.000000e+00 : f32
    %11 = vector.broadcast %cst : f32 to vector<8x32x64xf32>
    %12 = arith.maximumf %10, %11 : vector<8x32x64xf32>
    %c0_7 = arith.constant 0 : index
    %c0_8 = arith.constant 0 : index
    %c0_9 = arith.constant 0 : index
    %c0_10 = arith.constant 0 : index
    %13 = vector.load %arg5[%c0_7, %c0_8, %c0_9, %c0_10] : memref<1x8x32x64xf32, #tpu.memory_space<vmem>>, vector<1x8x32x64xf32>
    %14 = vector.shape_cast %13 : vector<1x8x32x64xf32> to vector<8x32x64xf32>
    %15 = vector.shape_cast %12 : vector<8x32x64xf32> to vector<1x8x32x64xf32>
    tpu.vector_store %arg5[%c0_7, %c0_8, %c0_9, %c0_10], %15 {strides = array<i32>} : memref<1x8x32x64xf32, #tpu.memory_space<vmem>>, vector<1x8x32x64xf32>,
    return
  }
  func.func @transform_0(%arg0: i32, %arg1: i32) -> (i32, i32, i32, i32) {
    %c0_i32 = arith.constant 0 : i32
    %c0_i32_0 = arith.constant 0 : i32
    %c0_i32_1 = arith.constant 0 : i32
    return %arg1, %arg0, %c0_i32, %c0_i32_0 : i32, i32, i32, i32
  }
  func.func @transform_1(%arg0: i32, %arg1: i32) -> (i32, i32) {
    %c0_i32 = arith.constant 0 : i32
    %c0_i32_0 = arith.constant 0 : i32
    %c0_i32_1 = arith.constant 0 : i32
    return %c0_i32, %c0_i32_0 : i32, i32
  }
  func.func @transform_2(%arg0: i32, %arg1: i32) -> (i32, i32) {
    %c0_i32 = arith.constant 0 : i32
    %c0_i32_0 = arith.constant 0 : i32
    %c0_i32_1 = arith.constant 0 : i32
    return %c0_i32, %c0_i32_0 : i32, i32
  }
  func.func @transform_3(%arg0: i32, %arg1: i32) -> (i32, i32, i32, i32) {
    %c0_i32 = arith.constant 0 : i32
    %c0_i32_0 = arith.constant 0 : i32
    %c0_i32_1 = arith.constant 0 : i32
    return %arg0, %arg1, %c0_i32, %c0_i32_0 : i32, i32, i32, i32
  }
}

</mosaic_0001>

<bundles_post_ra>
// kernel: _lambda_.3
= control target key start
LH: loop header
LB: loop body
LE: loop exit
PB: predicated region body
PF: predicated region fallthrough
CT: control target
= control target key end

     0   :  { %8 = vsyncpa [#allocation4], 0  ;;  %s1283_s0 = inlined_call_operand.vmem [shape: bf16[8,2,32,64], index: 0, kind: input, shape index: {}]   ;;  %s1284_s1 = inlined_call_operand.vmem [shape: f32[32,1], index: 1, kind: input, shape index: {}]   ;;  %s1285_s2 = inlined_call_operand.vmem [shape: f32[32,1], index: 2, kind: input, shape index: {}]   ;;  %s1286_s3 = inlined_call_operand.hbm [shape: f32[2,8,32,64], index: 3, kind: output, shape index: {}]  }
   0x1   :  { %10 = vsyncpa [#allocation4 + $0x1], 0  ;;  %s956_s12 = smov 0   ;;  %s958_s13 = smov 0  }
   0x2   :  { %s960_s14 = smov 0   ;;  %s962_s15 = smov 0  }
   0x3   :  { %s964_s16 = smov 0   ;;  %s966_s17 = smov 0  }
   0x4 LB: > { %s696_s18 = sadd.s32 4294967295, %s930_s17   ;;  %s697_s19 = sadd.s32 4294967294, %s930_s17   ;;  %s930_s17 = sphi %s966_s17, %s16_s17   ;;  %s926_s16 = sphi %s964_s16, %s1293_s16   ;;  %s922_s15 = sphi %s962_s15, %s1292_s15   ;;  %s918_s14 = sphi %s960_s14, %s1291_s14   ;;  %s914_s13 = sphi %s958_s13, %s1290_s13   ;;  %s910_s12 = sphi %s956_s12, %s1289_s12  }
   0x5   : > { %s28_s20 = sadd.s32 1, %s926_s16  ;;  %s37_s21 = sadd.s32 1, %s918_s14 }
   0x6   : > { %p30_p0 = scmp.ge.s32.totalorder %s28_s20, 2  ;;  %p44_p1 = scmp.ne.s32.totalorder %s918_s14, %s914_s13 }
   0x7   : > { %p45_p2 = scmp.eq.s32.totalorder %s930_s17, 0  ;;  %p118_p3 = scmp.eq.s32.totalorder %s696_s18, 1 }
   0x8   : > { %s1295_s20 = smov (%p30_p0, %s28_s20), 0  ;;  %p123_p6 = scmp.ne.s32.totalorder %s914_s13, %s910_s12 }
   0x9   : > { %p46_p4 = por %p45_p2, %p44_p1  ;;  %p995_p5 = por %p118_p3, %p44_p1 }
   0xa   : > { %s33_s23 = ssub.s32 %s926_s16, %s1295_s20  ;;  %p124_p8 = scmp.eq.s32.totalorder %s697_s19, 1 }
   0xb   : > { %p35_p7 = scmp.eq.s32.totalorder %s33_s23, 0  ;;  %p699_p10 = scmp.ge.s32.totalorder %s930_s17, 2 }
   0xc   : > { %p1006_p9 = por %p124_p8, %p123_p6 }
   0xd   : > { %s1004_s24 = scalar_select %p35_p7, %s918_s14, %s37_s21  }
   0xe   : > { %146 = sbr.rel (%p699_p10) target bundleno = 33 (0x21), region = 24 }
  0x15   : > { %149 = sbr.rel (!%p46_p4) target bundleno = 33 (0x21), region = 28  ;;  %s151_s26 = sand.u32 (%p46_p4), 1, %s918_s14  }
  0x16   : > { %s711_s27 = sshll.u32 (%p46_p4), %s926_s16, 4  ;;  %s700_s28 = sshll.u32 (%p46_p4), %s151_s26, 7 }
  0x17   : > { %s1018_s4 = scalar_lea.vmem (%p46_p4), %s1283_s0, %s711_s27  ;;  %s153_s5 = scalar_lea.vmem (%p46_p4), [#allocation2], %s700_s28 }
  0x18   : > { %v175_v0 = vld [vmem:[%s1018_s4] sm:$0xff] (%p46_p4)   ;;  %v179_v1 = vld [vmem:[%s1018_s4 + $0x8] sm:$0xff] (%p46_p4)  }
  0x19   : > { %v183_v2 = vld [vmem:[%s1018_s4 + $0x20] sm:$0xff] (%p46_p4)   ;;  %176 = vst [vmem:[%s153_s5] sm:$0xff] (%p46_p4), %v175_v0   ;;  %180 = vst [vmem:[%s153_s5 + $0x8] sm:$0xff] (%p46_p4), %v179_v1   ;;  %v187_v3 = vld [vmem:[%s1018_s4 + $0x28] sm:$0xff] (%p46_p4)  }
  0x1a   : > { %184 = vst [vmem:[%s153_s5 + $0x10] sm:$0xff] (%p46_p4), %v183_v2   ;;  %v191_v4 = vld [vmem:[%s1018_s4 + $0x40] sm:$0xff] (%p46_p4)   ;;  %v195_v5 = vld [vmem:[%s1018_s4 + $0x48] sm:$0xff] (%p46_p4)   ;;  %188 = vst [vmem:[%s153_s5 + $0x18] sm:$0xff] (%p46_p4), %v187_v3  }
  0x1b   : > { %192 = vst [vmem:[%s153_s5 + $0x20] sm:$0xff] (%p46_p4), %v191_v4   ;;  %196 = vst [vmem:[%s153_s5 + $0x28] sm:$0xff] (%p46_p4), %v195_v5   ;;  %v199_v6 = vld [vmem:[%s1018_s4 + $0x60] sm:$0xff] (%p46_p4)   ;;  %v203_v7 = vld [vmem:[%s1018_s4 + $0x68] sm:$0xff] (%p46_p4)  }
  0x1c   : > { %v207_v8 = vld [vmem:[%s1018_s4 + $0x80] sm:$0xff]   ;;  %200 = vst [vmem:[%s153_s5 + $0x30] sm:$0xff] %v199_v6   ;;  %204 = vst [vmem:[%s153_s5 + $0x38] sm:$0xff] %v203_v7   ;;  %v211_v9 = vld [vmem:[%s1018_s4 + $0x88] sm:$0xff]  }
  0x1d   : > { %208 = vst [vmem:[%s153_s5 + $0x40] sm:$0xff] %v207_v8   ;;  %v215_v10 = vld [vmem:[%s1018_s4 + $0xa0] sm:$0xff]   ;;  %v219_v11 = vld [vmem:[%s1018_s4 + $0xa8] sm:$0xff]   ;;  %212 = vst [vmem:[%s153_s5 + $0x48] sm:$0xff] %v211_v9  }
  0x1e   : > { %216 = vst [vmem:[%s153_s5 + $0x50] sm:$0xff] %v215_v10   ;;  %220 = vst [vmem:[%s153_s5 + $0x58] sm:$0xff] %v219_v11   ;;  %v223_v12 = vld [vmem:[%s1018_s4 + $0xc0] sm:$0xff]   ;;  %v227_v13 = vld [vmem:[%s1018_s4 + $0xc8] sm:$0xff]  }
  0x1f   : > { %v231_v14 = vld [vmem:[%s1018_s4 + $0xe0] sm:$0xff]   ;;  %224 = vst [vmem:[%s153_s5 + $0x60] sm:$0xff] %v223_v12   ;;  %228 = vst [vmem:[%s153_s5 + $0x68] sm:$0xff] %v227_v13   ;;  %v235_v15 = vld [vmem:[%s1018_s4 + $0xe8] sm:$0xff]  }
  0x20   : > { %232 = vst [vmem:[%s153_s5 + $0x70] sm:$0xff] %v231_v14   ;;  %236 = vst [vmem:[%s153_s5 + $0x78] sm:$0xff] %v235_v15  }
  0x21 PF: > { %p703_p11 = scmp.ge.s32.totalorder %s930_s17, 1  ;;  %p324_p12 = scmp.lt.s32.totalorder %s930_s17, 3 }
  0x23   : > { %p325_p13 = pnand %p703_p11, %p324_p12 }
  0x24   : > { %v422_v16 = vld [vmem:[%s1284_s1 + $0x10] sm:$0xff] (!%p325_p13)  ;;  %v420_v17 = vld [vmem:[%s1284_s1] sm:$0xff] (!%p325_p13)  ;;  %v932_v18 = vmov (!%p325_p13), 0   ;;  %v423_v19 = vld [vmem:[%s1284_s1 + $0x18] sm:$0xff] (!%p325_p13)  ;;  %s1063_s5 = sand.u32 (!%p325_p13), 1, %s914_s13   ;;  %vm564_vm0 = vcmask (!%p325_p13), 523264  }
  0x25   : > { %328 = sbr.rel (%p325_p13) target bundleno = 209 (0xd1), region = 69  ;;  %851 = vset.pattern.permute.xlu1 (!%p325_p13), %v932_v18  ;;  %850 = vset.pattern.permute.xlu0 (!%p325_p13), %v932_v18  ;;  %v421_v20 = vld [vmem:[%s1284_s1 + $0x8] sm:$0xff] (!%p325_p13)  ;;  %v476_v22 = vld [vmem:[%s1285_s2] sm:$0xff] (!%p325_p13)  ;;  %v479_v23 = vld [vmem:[%s1285_s2 + $0x18] sm:$0xff] (!%p325_p13)  ;;  %s704_s6 = sshll.u32 (!%p325_p13), %s1063_s5, 7 }
  0x26   : > { %436 = vperm.xlu1 (!%p325_p13), %851, %v422_v16   ;;  %426 = vperm.xlu0 (!%p325_p13), %850, %v420_v17   ;;  %v477_v21 = vld [vmem:[%s1285_s2 + $0x8] sm:$0xff] (!%p325_p13)  ;;  %v478_v24 = vld [vmem:[%s1285_s2 + $0x10] sm:$0xff] (!%p325_p13)  ;;  %s1066_s7 = scalar_lea.vmem (!%p325_p13), [#allocation2], %s704_s6  ;;  %s705_s8 = sshll.u32 (!%p325_p13), %s1063_s5, 8 }
  0x27   : > { %v1069_v25 = vld [vmem:[%s1066_s7] sm:$0xff] (!%p325_p13)   ;;  %v1072_v26 = vld [vmem:[%s1066_s7 + $0x10] sm:$0xff] (!%p325_p13)   ;;  %v1101_v41 = vld [vmem:[%s1066_s7 + $0x8] sm:$0xff] (!%p325_p13)   ;;  %s1149_s9 = scalar_lea.vmem (!%p325_p13), [#allocation3], %s705_s8  ;;  %s712_s10 = sshll.u32 (!%p325_p13), %s922_s15, 12 }
  0x28   : > { %v1075_v27 = vld [vmem:[%s1066_s7 + $0x20] sm:$0xff] (!%p325_p13)   ;;  %v1078_v28 = vld [vmem:[%s1066_s7 + $0x30] sm:$0xff] (!%p325_p13)   ;;  %v715_v33 = vunpack.c.l.bf16 (!%p325_p13), %v1069_v25  ;;  %v723_v34 = vunpack.c.l.bf16 (!%p325_p13), %v1072_v26  ;;  %v716_v40 = vunpack.c.h.bf16 (!%p325_p13), %v1069_v25  ;;  %v1104_v42 = vld [vmem:[%s1066_s7 + $0x18] sm:$0xff] (!%p325_p13)   ;;  %v724_v44 = vunpack.c.h.bf16 (!%p325_p13), %v1072_v26  ;;  %s614_s11 = sshll.u32 (!%p325_p13), %s1149_s9, 4  ;;  %s1216_s19 = scalar_lea.hbm (!%p325_p13), %s1286_s3, %s712_s10  ;;  %s1218_s11 = int_to_ptr.vmem [resolvable:$true] %s614_s11 }
  0x29   : > { %v1081_v29 = vld [vmem:[%s1066_s7 + $0x40] sm:$0xff] (!%p325_p13)   ;;  %v1084_v30 = vld [vmem:[%s1066_s7 + $0x50] sm:$0xff] (!%p325_p13)   ;;  %v731_v35 = vunpack.c.l.bf16 (!%p325_p13), %v1075_v27  ;;  %v739_v36 = vunpack.c.l.bf16 (!%p325_p13), %v1078_v28  ;;  %v732_v45 = vunpack.c.h.bf16 (!%p325_p13), %v1075_v27  ;;  %v740_v46 = vunpack.c.h.bf16 (!%p325_p13), %v1078_v28  ;;  %v781_v51 = vld [vmem:[%s1066_s7 + $0x28] sm:$0xff] (!%p325_p13)   ;;  %s598_s21 = scalar_lea.sflag (!%p325_p13), [#allocation4], %s1063_s5  ;;  %s852_s23 = scalar_lea.vmem (!%p325_p13), %s1218_s11, 4096 }
  0x2a   : > { %441 = vperm.xlu1 (!%p325_p13), %851, %v423_v19   ;;  %431 = vperm.xlu0 (!%p325_p13), %850, %v421_v20   ;;  %v1087_v31 = vld [vmem:[%s1066_s7 + $0x60] sm:$0xff] (!%p325_p13)   ;;  %v1090_v32 = vld [vmem:[%s1066_s7 + $0x70] sm:$0xff] (!%p325_p13)   ;;  %v747_v37 = vunpack.c.l.bf16 (!%p325_p13), %v1081_v29  ;;  %v755_v38 = vunpack.c.l.bf16 (!%p325_p13), %v1084_v30  ;;  %v748_v47 = vunpack.c.h.bf16 (!%p325_p13), %v1081_v29  ;;  %v756_v48 = vunpack.c.h.bf16 (!%p325_p13), %v1084_v30  ;;  %v783_v52 = vld [vmem:[%s1066_s7 + $0x38] sm:$0xff] (!%p325_p13)   ;;  %p853_p0 = scmp.ne.s32.totalorder (!%p325_p13), %s1218_s11, %s852_s23  ;;  %s933_s26 = smov (!%p325_p13), [#allocation3]  }
  0x2b   : > { %v763_v39 = vunpack.c.l.bf16 (!%p325_p13), %v1087_v31  ;;  %v771_v43 = vunpack.c.l.bf16 (!%p325_p13), %v1090_v32  ;;  %v764_v49 = vunpack.c.h.bf16 (!%p325_p13), %v1087_v31  ;;  %v772_v50 = vunpack.c.h.bf16 (!%p325_p13), %v1090_v32  ;;  %v785_v53 = vld [vmem:[%s1066_s7 + $0x48] sm:$0xff] (!%p325_p13)   ;;  %v787_v56 = vld [vmem:[%s1066_s7 + $0x58] sm:$0xff] (!%p325_p13)   ;;  %s856_s27 = sshll.u32 (!%p325_p13), %s933_s26, 4  ;;  %s857_s27 = int_to_ptr.vmem [resolvable:$false] %s856_s27 }
  0x2c   : > { %v720_v54 = vunpack.c.h.bf16 %v1101_v41  ;;  %v728_v55 = vunpack.c.h.bf16 %v1104_v42  ;;  %v789_v57 = vld [vmem:[%s1066_s7 + $0x68] sm:$0xff]   ;;  %v791_v58 = vld [vmem:[%s1066_s7 + $0x78] sm:$0xff]   ;;  %v719_v59 = vunpack.c.l.bf16 %v1101_v41  ;;  %v727_v60 = vunpack.c.l.bf16 %v1104_v42  ;;  %p854_p1 = pnand %p853_p0, %p995_p5  ;;  %s858_s28 = scalar_lea.vmem %s857_s27, 8192 }
  0x2d   : > { %v736_v61 = vunpack.c.h.bf16 %v781_v51  ;;  %v744_v62 = vunpack.c.h.bf16 %v783_v52  ;;  %v752_v63 = vunpack.c.h.bf16 %v785_v53  ;;  %v760_v0 = vunpack.c.h.bf16 %v787_v56  ;;  %p859_p3 = scmp.lt.s32.totalorder %s1218_s11, %s857_s27  ;;  %p860_p4 = scmp.lt.s32.totalorder %s858_s28, %s852_s23 }
  0x2e   : > { %487 = vperm.xlu1 %851, %v477_v21   ;;  %482 = vperm.xlu0 %850, %v476_v22   ;;  %v768_v1 = vunpack.c.h.bf16 %v789_v57  ;;  %v776_v2 = vunpack.c.h.bf16 %v791_v58  ;;  %v735_v3 = vunpack.c.l.bf16 %v781_v51  ;;  %v743_v4 = vunpack.c.l.bf16 %v783_v52  ;;  %p855_p2 = pneg %p854_p1 }
  0x2f   : > { %v751_v7 = vunpack.c.l.bf16 %v785_v53  ;;  %v759_v8 = vunpack.c.l.bf16 %v787_v56  ;;  %v767_v9 = vunpack.c.l.bf16 %v789_v57  ;;  %v775_v10 = vunpack.c.l.bf16 %v791_v58  ;;  %p861_p6 = por %p860_p4, %p859_p3 }
  0x31   : > { %p862_p7 = pnand %p861_p6, %p855_p2 }
  0x32   : > { %497 = vperm.xlu1 %851, %v479_v23   ;;  %492 = vperm.xlu0 %850, %v478_v24  }
  0xa5   : > { %v437_v5 = vpop.permute.xlu1 %436  ;;  %v427_v6 = vpop.permute.xlu0 %426 }
  0xa6   : > { %v444_v11 = vmul.f32 %v715_v33, %v427_v6  ;;  %v448_v12 = vmul.f32 %v723_v34, %v427_v6  ;;  %v452_v13 = vmul.f32 %v731_v35, %v427_v6  ;;  %v456_v14 = vmul.f32 %v739_v36, %v427_v6 }
  0xa7   : > { %v1124_v15 = vmul.f32 %v747_v37, %v427_v6  ;;  %v1126_v16 = vmul.f32 %v755_v38, %v427_v6  ;;  %v1128_v17 = vmul.f32 %v763_v39, %v427_v6  ;;  %v1130_v18 = vmul.f32 %v771_v43, %v427_v6 }
  0xa8   : > { %v1132_v19 = vmul.f32 %v719_v59, %v437_v5  ;;  %v1134_v20 = vmul.f32 %v727_v60, %v437_v5  ;;  %v1136_v21 = vmul.f32 %v735_v3, %v437_v5  ;;  %v1138_v22 = vmul.f32 %v743_v4, %v437_v5 }
  0xa9   : > { %v442_v23 = vpop.permute.xlu1 %441  ;;  %v432_v24 = vpop.permute.xlu0 %431  ;;  %v1140_v25 = vmul.f32 %v751_v7, %v437_v5  ;;  %v1142_v26 = vmul.f32 %v759_v8, %v437_v5  ;;  %v1144_v27 = vmul.f32 %v767_v9, %v437_v5  ;;  %v1146_v28 = vmul.f32 %v775_v10, %v437_v5 }
  0xaa   : > { %v445_v29 = vmul.f32 %v716_v40, %v432_v24  ;;  %v449_v30 = vmul.f32 %v724_v44, %v432_v24  ;;  %v453_v31 = vmul.f32 %v732_v45, %v432_v24  ;;  %v457_v32 = vmul.f32 %v740_v46, %v432_v24 }
  0xab   : > { %v461_v33 = vmul.f32 %v748_v47, %v432_v24  ;;  %v465_v34 = vmul.f32 %v756_v48, %v432_v24  ;;  %v469_v35 = vmul.f32 %v764_v49, %v432_v24  ;;  %v473_v36 = vmul.f32 %v772_v50, %v432_v24 }
  0xac   : > { %v447_v37 = vmul.f32 %v720_v54, %v442_v23  ;;  %v451_v38 = vmul.f32 %v728_v55, %v442_v23  ;;  %v455_v39 = vmul.f32 %v736_v61, %v442_v23  ;;  %v459_v41 = vmul.f32 %v744_v62, %v442_v23 }
  0xad   : > { %v488_v42 = vpop.permute.xlu1 %487  ;;  %v463_v43 = vmul.f32 %v752_v63, %v442_v23  ;;  %v467_v51 = vmul.f32 %v760_v0, %v442_v23  ;;  %v471_v52 = vmul.f32 %v768_v1, %v442_v23  ;;  %v475_v53 = vmul.f32 %v776_v2, %v442_v23  ;;  %v483_v49 = vpop.permute.xlu0 %482 }
  0xae   : > { %v501_v56 = vadd.f32 %v488_v42, %v445_v29  ;;  %v505_v57 = vadd.f32 %v488_v42, %v449_v30  ;;  %v509_v40 = vadd.f32 %v488_v42, %v453_v31  ;;  %v513_v44 = vadd.f32 %v488_v42, %v457_v32 }
  0xaf   : > { %v517_v45 = vadd.f32 %v488_v42, %v461_v33  ;;  %v521_v46 = vadd.f32 %v488_v42, %v465_v34  ;;  %v525_v47 = vadd.f32 %v488_v42, %v469_v35  ;;  %v529_v48 = vadd.f32 %v488_v42, %v473_v36 }
  0xb0   : > { %v533_v50 = vmax.f32 %v501_v56, 0.0  ;;  %v537_v58 = vmax.f32 %v505_v57, 0.0  ;;  %v541_v54 = vmax.f32 %v509_v40, 0.0  ;;  %v545_v55 = vmax.f32 %v513_v44, 0.0 }
  0xb1   : > { %v549_v59 = vmax.f32 %v517_v45, 0.0  ;;  %v553_v60 = vmax.f32 %v521_v46, 0.0  ;;  %v557_v61 = vmax.f32 %v525_v47, 0.0  ;;  %v561_v62 = vmax.f32 %v529_v48, 0.0  ;;  %v498_v7 = vpop.permute.xlu1 %497  ;;  %v493_v32 = vpop.permute.xlu0 %492 }
  0xb2   : > { %566 = vst.msk [vmem:[%s1149_s9 + $0x8] sm:$0xff] %vm564_vm0, %v533_v50  ;;  %570 = vst.msk [vmem:[%s1149_s9 + $0x28] sm:$0xff] %vm564_vm0, %v537_v58  ;;  %v500_v63 = vadd.f32 %v483_v49, %v444_v11  ;;  %v504_v0 = vadd.f32 %v483_v49, %v448_v12  ;;  %v508_v1 = vadd.f32 %v483_v49, %v452_v13 }
  0xb3   : > { %574 = vst.msk [vmem:[%s1149_s9 + $0x48] sm:$0xff] %vm564_vm0, %v541_v54  ;;  %578 = vst.msk [vmem:[%s1149_s9 + $0x68] sm:$0xff] %vm564_vm0, %v545_v55  ;;  %v512_v2 = vadd.f32 %v483_v49, %v456_v14  ;;  %v516_v3 = vadd.f32 %v483_v49, %v1124_v15  ;;  %v520_v4 = vadd.f32 %v483_v49, %v1126_v16 }
  0xb4   : > { %582 = vst.msk [vmem:[%s1149_s9 + $0x88] sm:$0xff] %vm564_vm0, %v549_v59  ;;  %586 = vst.msk [vmem:[%s1149_s9 + $0xa8] sm:$0xff] %vm564_vm0, %v553_v60  ;;  %v524_v5 = vadd.f32 %v483_v49, %v1128_v17  ;;  %v528_v6 = vadd.f32 %v483_v49, %v1130_v18  ;;  %v532_v8 = vmax.f32 %v500_v63, 0.0  ;;  %v536_v9 = vmax.f32 %v504_v0, 0.0 }
  0xb5   : > { %590 = vst.msk [vmem:[%s1149_s9 + $0xc8] sm:$0xff] %vm564_vm0, %v557_v61  ;;  %594 = vst.msk [vmem:[%s1149_s9 + $0xe8] sm:$0xff] %vm564_vm0, %v561_v62  ;;  %v540_v10 = vmax.f32 %v508_v1, 0.0  ;;  %v544_v11 = vmax.f32 %v512_v2, 0.0  ;;  %v548_v12 = vmax.f32 %v516_v3, 0.0  ;;  %v552_v13 = vmax.f32 %v520_v4, 0.0 }
  0xb6   : > { %v556_v14 = vmax.f32 %v524_v5, 0.0  ;;  %v560_v15 = vmax.f32 %v528_v6, 0.0  ;;  %565 = vst.msk [vmem:[%s1149_s9] sm:$0xff] %vm564_vm0, %v532_v8  ;;  %569 = vst.msk [vmem:[%s1149_s9 + $0x20] sm:$0xff] %vm564_vm0, %v536_v9  ;;  %v503_v16 = vadd.f32 %v498_v7, %v447_v37  ;;  %v507_v17 = vadd.f32 %v498_v7, %v451_v38 }
  0xb7   : > { %573 = vst.msk [vmem:[%s1149_s9 + $0x40] sm:$0xff] %vm564_vm0, %v540_v10  ;;  %577 = vst.msk [vmem:[%s1149_s9 + $0x60] sm:$0xff] %vm564_vm0, %v544_v11  ;;  %v511_v18 = vadd.f32 %v498_v7, %v455_v39  ;;  %v515_v23 = vadd.f32 %v498_v7, %v459_v41  ;;  %v519_v24 = vadd.f32 %v498_v7, %v463_v43 }
  0xb8   : > { %581 = vst.msk [vmem:[%s1149_s9 + $0x80] sm:$0xff] %vm564_vm0, %v548_v12  ;;  %585 = vst.msk [vmem:[%s1149_s9 + $0xa0] sm:$0xff] %vm564_vm0, %v552_v13  ;;  %v523_v29 = vadd.f32 %v498_v7, %v467_v51  ;;  %v527_v30 = vadd.f32 %v498_v7, %v471_v52  ;;  %v531_v31 = vadd.f32 %v498_v7, %v475_v53  ;;  %v535_v33 = vmax.f32 %v503_v16, 0.0 }
  0xb9   : > { %589 = vst.msk [vmem:[%s1149_s9 + $0xc0] sm:$0xff] %vm564_vm0, %v556_v14  ;;  %593 = vst.msk [vmem:[%s1149_s9 + $0xe0] sm:$0xff] %vm564_vm0, %v560_v15  ;;  %v539_v34 = vmax.f32 %v507_v17, 0.0  ;;  %v543_v35 = vmax.f32 %v511_v18, 0.0  ;;  %v547_v36 = vmax.f32 %v515_v23, 0.0  ;;  %v551_v37 = vmax.f32 %v519_v24, 0.0 }
  0xba   : > { %v555_v38 = vmax.f32 %v523_v29, 0.0  ;;  %v559_v39 = vmax.f32 %v527_v30, 0.0  ;;  %v563_v41 = vmax.f32 %v531_v31, 0.0  ;;  %568 = vst.msk [vmem:[%s1149_s9 + $0x18] sm:$0xff] %vm564_vm0, %v535_v33  ;;  %v502_v42 = vadd.f32 %v493_v32, %v1132_v19 }
  0xbb   : > { %572 = vst.msk [vmem:[%s1149_s9 + $0x38] sm:$0xff] %vm564_vm0, %v539_v34  ;;  %576 = vst.msk [vmem:[%s1149_s9 + $0x58] sm:$0xff] %vm564_vm0, %v543_v35  ;;  %v506_v43 = vadd.f32 %v493_v32, %v1134_v20  ;;  %v510_v51 = vadd.f32 %v493_v32, %v1136_v21  ;;  %v514_v52 = vadd.f32 %v493_v32, %v1138_v22 }
  0xbc   : > { %580 = vst.msk [vmem:[%s1149_s9 + $0x78] sm:$0xff] %vm564_vm0, %v547_v36  ;;  %584 = vst.msk [vmem:[%s1149_s9 + $0x98] sm:$0xff] %vm564_vm0, %v551_v37  ;;  %v518_v53 = vadd.f32 %v493_v32, %v1140_v25  ;;  %v522_v19 = vadd.f32 %v493_v32, %v1142_v26  ;;  %v526_v20 = vadd.f32 %v493_v32, %v1144_v27  ;;  %v534_v22 = vmax.f32 %v502_v42, 0.0 }
  0xbd   : > { %588 = vst.msk [vmem:[%s1149_s9 + $0xb8] sm:$0xff] %vm564_vm0, %v555_v38  ;;  %592 = vst.msk [vmem:[%s1149_s9 + $0xd8] sm:$0xff] %vm564_vm0, %v559_v39  ;;  %v530_v21 = vadd.f32 %v493_v32, %v1146_v28  ;;  %v538_v56 = vmax.f32 %v506_v43, 0.0  ;;  %v542_v57 = vmax.f32 %v510_v51, 0.0  ;;  %v546_v40 = vmax.f32 %v514_v52, 0.0 }
  0xbe   : > { %596 = vst.msk [vmem:[%s1149_s9 + $0xf8] sm:$0xff] %vm564_vm0, %v563_v41  ;;  %v550_v25 = vmax.f32 %v518_v53, 0.0  ;;  %v554_v26 = vmax.f32 %v522_v19, 0.0  ;;  %v558_v27 = vmax.f32 %v526_v20, 0.0  ;;  %567 = vst.msk [vmem:[%s1149_s9 + $0x10] sm:$0xff] %vm564_vm0, %v534_v22 }
  0xbf   : > { %v562_v28 = vmax.f32 %v530_v21, 0.0  ;;  %571 = vst.msk [vmem:[%s1149_s9 + $0x30] sm:$0xff] %vm564_vm0, %v538_v56  ;;  %575 = vst.msk [vmem:[%s1149_s9 + $0x50] sm:$0xff] %vm564_vm0, %v542_v57 }
  0xc0   : > { %579 = vst.msk [vmem:[%s1149_s9 + $0x70] sm:$0xff] %vm564_vm0, %v546_v40  ;;  %583 = vst.msk [vmem:[%s1149_s9 + $0x90] sm:$0xff] %vm564_vm0, %v550_v25 }
  0xc1   : > { %587 = vst.msk [vmem:[%s1149_s9 + $0xb0] sm:$0xff] %vm564_vm0, %v554_v26  ;;  %591 = vst.msk [vmem:[%s1149_s9 + $0xd0] sm:$0xff] %vm564_vm0, %v558_v27 }
  0xc2   : > { %595 = vst.msk [vmem:[%s1149_s9 + $0xf0] sm:$0xff] %vm564_vm0, %v562_v28 }
  0xc3   : > { %865 = shalt.err (!%p862_p7)
}
  0xc4   : > { %s866_s29 = scalar_lea.hbm %s1216_s19, 4096  ;;  %s870_s6 = scalar_lea.hbm %s1286_s3, 8192 }
  0xc5   : > { %p867_p8 = scmp.ne.s32.totalorder %s1216_s19, %s866_s29  ;;  %p871_p13 = scmp.lt.u32.totalorder %s1216_s19, %s1286_s3 }
  0xc6   : > { %p872_p0 = scmp.lt.u32.totalorder %s870_s6, %s866_s29  ;;  %p874_p2 = scmp.lt.u32.totalorder %s866_s29, %s1216_s19 }
  0xc7   : > { %p868_p11 = pnand %p867_p8, %p995_p5 }
  0xc8   : > { %p873_p1 = por %p872_p0, %p871_p13 }
  0xc9   : > { %p869_p12 = pneg %p868_p11 }
  0xca   : > { %p875_p3 = por %p874_p2, %p873_p1 }
  0xcc   : > { %p876_p4 = pnand %p875_p3, %p869_p12 }
  0xce   : > { %879 = shalt.err (!%p876_p4)
}
  0xcf   : > { %s934_s9 = smov 128   ;;  %s935_s10 = smov 8  }
  0xd0   : > { %792 = dma.vmem_to_hbm [thread:$0]  (%p995_p5), %s1218_s11, 4096, %s1216_s19, %s598_s21, %s934_s9, %s934_s9, %s935_s10  }
  0xd1 PF: > { %s629_s15 = sand.u32 1, %s910_s12   ;;  %p795_p6 = pnand %p699_p10, %p1006_p9 }
  0xd2   : > { %s630_s18 = scalar_lea.sflag [#allocation4], %s629_s15 }
  0xd3   : > { %905 = dma.done.wait (!%p795_p6), %s630_s18, 4096  }
  0xd4   : > { %907 = vsyncadd (!%p795_p6), %s630_s18, 4294963200  ;;  %s16_s17 = sadd.s32 1, %s930_s17   ;;  %s1289_s12 = smov %s914_s13 }
  0xd5   : > { %p13_p7 = scmp.ge.s32.totalorder %s16_s17, 4   ;;  %s1290_s13 = smov %s918_s14 }
  0xd6   : > { %s1291_s14 = smov %s1004_s24  ;;  %s1292_s15 = smov %s926_s16 }
  0xd7   : > { %s1293_s16 = smov %s1295_s20  ;;  %15 = sbr.rel (!%p13_p7) target bundleno = 4 (0x4), region = 113 }
  0xde   :  { %635 = vsyncpa [#allocation4], 1 }
  0xdf   :  { %637 = vsyncpa [#allocation4 + $0x1], 1 }

// kernel: _lambda_.2
= control target key start
LH: loop header
LB: loop body
LE: loop exit
PB: predicated region body
PF: predicated region fallthrough
CT: control target
= control target key end

     0   :  { %s2178_s21 = smov 0   ;;  %s2180_s22 = smov 0   ;;  %s2803_s0 = inlined_call_operand.vmem [shape: bf16[1,8,16,64], index: 0, kind: input, shape index: {}]   ;;  %s2804_s1 = inlined_call_operand.vmem [shape: bf16[256,240], index: 1, kind: input, shape index: {}]   ;;  %s2805_s2 = inlined_call_operand.vmem [shape: f32[256,1], index: 2, kind: input, shape index: {}]   ;;  %s2806_s3 = inlined_call_operand.vmem [shape: bf16[64,64], index: 3, kind: input, shape index: {}]   ;;  %s2807_s4 = inlined_call_operand.vmem [shape: bf16[8,2,32,64], index: 4, kind: output, shape index: {0}]   ;;  %s2808_s5 = inlined_call_operand.vmem [shape: f32[1,64,1], index: 5, kind: output, shape index: {1}]   ;;  %s2809_s6 = inlined_call_operand.vmem [shape: f32[1,64,1], index: 6, kind: output, shape index: {2}]  }
   0x1   :  { %s2182_s23 = smov 0  }
   0x2 LB: > { %s26_s24 = sadd.s32 1, %s2132_s22  ;;  %p1749_p0 = scmp.ge.s32.totalorder %s2136_s23, 1  ;;  %s2136_s23 = sphi %s2182_s23, %s17_s23   ;;  %s2132_s22 = sphi %s2180_s22, %s2811_s22   ;;  %s2128_s21 = sphi %s2178_s21, %s2810_s21  }
   0x3   : > { %p27_p1 = scmp.ge.s32.totalorder %s26_s24, 8  ;;  %p213_p2 = scmp.lt.s32.totalorder %s2136_s23, 9 }
   0x5   : > { %s2813_s24 = smov (%p27_p1, %s26_s24), 0  ;;  %p214_p3 = pnand %p1749_p0, %p213_p2 }
   0x6   : > { %p262_p4 = scmp.lt.s32.totalorder (!%p214_p3), %s2128_s21, 7  ;;  %p1754_p5 = scmp.ne.s32.totalorder (!%p214_p3), %s2128_s21, 0 }
   0x7   : > { %217 = sbr.rel (%p214_p3) target bundleno = 1025 (0x401), region = 32 }
   0xe   : > { %s263_s25 = scalar_select %p262_p4, %s2128_s21, 7 }
   0xf   : > { %294 = sbr.rel (%p1754_p5) target bundleno = 43 (0x2b), region = 36  ;;  %v327_v0 = vld [vmem:[%s2806_s3] sm:$0xff] (!%p1754_p5)  ;;  %v329_v1 = vld [vmem:[%s2806_s3 + $0x8] sm:$0xff] (!%p1754_p5)  ;;  %v331_v2 = vld [vmem:[%s2806_s3 + $0x10] sm:$0xff] (!%p1754_p5) }
  0x10   : > { %s1833_s26 = sshll.u32 %s263_s25, 3  ;;  %s1834_s27 = sshll.u32 %s263_s25, 5  ;;  %328 = vst [vmem:[#allocation2] sm:$0xff] (!%p1754_p5), %v327_v0  ;;  %330 = vst [vmem:[#allocation2 + $0x8] sm:$0xff] (!%p1754_p5), %v329_v1  ;;  %v333_v3 = vld [vmem:[%s2806_s3 + $0x18] sm:$0xff] (!%p1754_p5) }
  0x11   : > { %s2203_s30 = scalar_lea.vmem %s2803_s0, %s1833_s26  ;;  %s2208_s9 = scalar_lea.vmem %s2807_s4, %s1834_s27  ;;  %332 = vst [vmem:[#allocation2 + $0x10] sm:$0xff] (!%p1754_p5), %v331_v2  ;;  %334 = vst [vmem:[#allocation2 + $0x18] sm:$0xff] (!%p1754_p5), %v333_v3 }
  0x16   : > { %342 = vsyncadd [#allocation3], 512  ;;  %vm343_vm0 = vcmask 523264   ;;  %v2138_v4 = vmov 0   ;;  %v2139_v5 = vmov 0.0  }
  0x17   : > { %344 = vst.msk [vmem:[#allocation4] sm:$0xff] %vm343_vm0, %v2138_v4  ;;  %345 = vst.msk [vmem:[#allocation4 + $0x8] sm:$0xff] %vm343_vm0, %v2138_v4 }
  0x18   : > { %346 = vst.msk [vmem:[#allocation4 + $0x10] sm:$0xff] %vm343_vm0, %v2138_v4  ;;  %347 = vst.msk [vmem:[#allocation4 + $0x18] sm:$0xff] %vm343_vm0, %v2138_v4 }
  0x19   : > { %348 = vst.msk [vmem:[#allocation4 + $0x20] sm:$0xff] %vm343_vm0, %v2138_v4  ;;  %349 = vst.msk [vmem:[#allocation4 + $0x28] sm:$0xff] %vm343_vm0, %v2138_v4 }
  0x1a   : > { %350 = vst.msk [vmem:[#allocation4 + $0x30] sm:$0xff] %vm343_vm0, %v2138_v4  ;;  %351 = vst.msk [vmem:[#allocation4 + $0x38] sm:$0xff] %vm343_vm0, %v2138_v4 }
  0x1b   : > { %352 = vst.msk [vmem:[#allocation4 + $0x40] sm:$0xff] %vm343_vm0, %v2138_v4  ;;  %353 = vst.msk [vmem:[#allocation4 + $0x48] sm:$0xff] %vm343_vm0, %v2138_v4 }
  0x1c   : > { %354 = vst.msk [vmem:[#allocation4 + $0x50] sm:$0xff] %vm343_vm0, %v2138_v4  ;;  %355 = vst.msk [vmem:[#allocation4 + $0x58] sm:$0xff] %vm343_vm0, %v2138_v4 }
  0x1d   : > { %356 = vst.msk [vmem:[#allocation4 + $0x60] sm:$0xff] %vm343_vm0, %v2138_v4  ;;  %357 = vst.msk [vmem:[#allocation4 + $0x68] sm:$0xff] %vm343_vm0, %v2138_v4 }
  0x1e   : > { %358 = vst.msk [vmem:[#allocation4 + $0x70] sm:$0xff] %vm343_vm0, %v2138_v4  ;;  %359 = vst.msk [vmem:[#allocation5] sm:$0xff] %vm343_vm0, %v2139_v5 }
  0x1f   : > { %360 = vst.msk [vmem:[#allocation5 + $0x8] sm:$0xff] %vm343_vm0, %v2139_v5  ;;  %361 = vst.msk [vmem:[#allocation5 + $0x10] sm:$0xff] %vm343_vm0, %v2139_v5 }
  0x20   : > { %362 = vst.msk [vmem:[#allocation5 + $0x18] sm:$0xff] %vm343_vm0, %v2139_v5  ;;  %363 = vst.msk [vmem:[#allocation5 + $0x20] sm:$0xff] %vm343_vm0, %v2139_v5 }
  0x21   : > { %364 = vst.msk [vmem:[#allocation5 + $0x28] sm:$0xff] %vm343_vm0, %v2139_v5  ;;  %365 = vst.msk [vmem:[#allocation5 + $0x30] sm:$0xff] %vm343_vm0, %v2139_v5 }
  0x22   : > { %366 = vst.msk [vmem:[#allocation5 + $0x38] sm:$0xff] %vm343_vm0, %v2139_v5  ;;  %367 = vst.msk [vmem:[#allocation6] sm:$0xff] %vm343_vm0, %v2139_v5 }
  0x23   : > { %368 = vst.msk [vmem:[#allocation6 + $0x8] sm:$0xff] %vm343_vm0, %v2139_v5  ;;  %369 = vst.msk [vmem:[#allocation6 + $0x10] sm:$0xff] %vm343_vm0, %v2139_v5 }
  0x24   : > { %370 = vst.msk [vmem:[#allocation6 + $0x18] sm:$0xff] %vm343_vm0, %v2139_v5  ;;  %371 = vst.msk [vmem:[#allocation6 + $0x20] sm:$0xff] %vm343_vm0, %v2139_v5 }
  0x25   : > { %372 = vst.msk [vmem:[#allocation6 + $0x28] sm:$0xff] %vm343_vm0, %v2139_v5  ;;  %373 = vst.msk [vmem:[#allocation6 + $0x30] sm:$0xff] %vm343_vm0, %v2139_v5 }
  0x26   : > { %374 = vst.msk [vmem:[#allocation6 + $0x38] sm:$0xff] %vm343_vm0, %v2139_v5  ;;  %375 = vst.msk [vmem:[#allocation7] sm:$0xff] %vm343_vm0, %v2139_v5 }
  0x27   : > { %376 = vst.msk [vmem:[#allocation7 + $0x8] sm:$0xff] %vm343_vm0, %v2139_v5  ;;  %377 = vst.msk [vmem:[#allocation7 + $0x10] sm:$0xff] %vm343_vm0, %v2139_v5 }
  0x28   : > { %378 = vst.msk [vmem:[#allocation7 + $0x18] sm:$0xff] %vm343_vm0, %v2139_v5  ;;  %379 = vst.msk [vmem:[#allocation7 + $0x20] sm:$0xff] %vm343_vm0, %v2139_v5 }
  0x29   : > { %380 = vst.msk [vmem:[#allocation7 + $0x28] sm:$0xff] %vm343_vm0, %v2139_v5  ;;  %381 = vst.msk [vmem:[#allocation7 + $0x30] sm:$0xff] %vm343_vm0, %v2139_v5 }
  0x2a   : > { %382 = vst.msk [vmem:[#allocation7 + $0x38] sm:$0xff] %vm343_vm0, %v2139_v5 }
  0x2b PF: > { %v1979_v6 = vld [vmem:[%s2203_s30] sm:$0xff]   ;;  %vm391_vm1 = vcmask 523264   ;;  %p1949_p6 = scmp.eq.s32.totalorder %s2128_s21, 0 }
  0x2c   : > { %392 = vst.msk [vmem:[#allocation4] sm:$0xff] %vm391_vm1, %v1979_v6 }
  0x2d   : > { %2123 = dma.done.wait (%p1949_p6), [#allocation3], 512 }
  0x2e   : > { %2125 = vsyncadd (%p1949_p6), [#allocation3], 4294966784  ;;  %v2140_v7 = vmov 0.0   ;;  %vm2141_vm2 = vmmov 0   ;;  %v2142_v8 = vmov 0   ;;  %v400_v9 = vld [vmem:[#allocation2] sm:$0xff] }
  0x2f   : > { %1861 = vmatprep.subr.bf16.mxu0 %v2140_v7  ;;  %1869 = vmatprep.mubr.msk.bf16.mxu0 %vm2141_vm2, %v2140_v7  ;;  %v401_v10 = vld [vmem:[#allocation2 + $0x8] sm:$0xff]  ;;  %v402_v11 = vld [vmem:[#allocation2 + $0x10] sm:$0xff]  ;;  %v403_v12 = vld [vmem:[#allocation2 + $0x18] sm:$0xff]  ;;  %vm1018_vm3 = vcmask 916480   ;;  %vm1410_vm4 = vcmask 519168   ;;  %p1827_p7 = scmp.ne.s32.totalorder %s2128_s21, 7 }
  0x30   : > { %1889 = vmatprep.subr.bf16.mxu1 %v2140_v7  ;;  %1897 = vmatprep.mubr.msk.bf16.mxu1 %vm2141_vm2, %v2140_v7  ;;  %v2289_v14 = vld [vmem:[#allocation4 + $0x8] sm:$0xff]  ;;  %v2295_v15 = vld [vmem:[#allocation4 + $0x10] sm:$0xff]  ;;  %v2301_v16 = vld [vmem:[#allocation4 + $0x18] sm:$0xff]  ;;  %vm1526_vm5 = vcmask (!%p1827_p7), 7168  }
  0x31   : > { %1981 = vset.pattern.permute.xlu1 %v2142_v8  ;;  %1980 = vset.pattern.permute.xlu0 %v2142_v8  ;;  %v2307_v17 = vld [vmem:[#allocation4 + $0x20] sm:$0xff]  ;;  %v684_v50 = vld [vmem:[%s2805_s2 + $0x10] sm:$0xff]  ;;  %v685_v52 = vld [vmem:[%s2805_s2 + $0x18] sm:$0xff] }
  0x32   : > { %1862 = vmatpush3.bf16.msra.mxu0 %v400_v9  ;;  %1890 = vmatpush3.bf16.msra.mxu1 %v400_v9  ;;  %v1984_v48 = vld [vmem:[%s2804_s1 + $0x4] ss:$8 sps:$4 sm:$0xff]   ;;  %v689_v56 = vld [vmem:[%s2805_s2 + $0x38] sm:$0xff]  ;;  %v688_v57 = vld [vmem:[%s2805_s2 + $0x30] sm:$0xff] }
  0x33   : > { %1863 = vmatprep.subr.bf16.mxu0 %v2140_v7  ;;  %1891 = vmatprep.subr.bf16.mxu1 %v2140_v7  ;;  %v2279_v13 = vld [vmem:[#allocation4] sm:$0xff]  ;;  %v683_v53 = vld [vmem:[%s2805_s2 + $0x8] sm:$0xff]  ;;  %v693_v60 = vld [vmem:[%s2805_s2 + $0x58] sm:$0xff] }
  0x34   : > { %v1987_v49 = vld [vmem:[%s2804_s1 + $0x84] ss:$8 sps:$4 sm:$0xff]   ;;  %726 = vperm.xlu1 %1981, %v684_v50   ;;  %v692_v61 = vld [vmem:[%s2805_s2 + $0x50] sm:$0xff]  ;;  %v697_v0 = vld [vmem:[%s2805_s2 + $0x78] sm:$0xff] }
  0x35   : > { %v682_v51 = vld [vmem:[%s2805_s2] sm:$0xff]  ;;  %v687_v54 = vld [vmem:[%s2805_s2 + $0x28] sm:$0xff]  ;;  %v696_v1 = vld [vmem:[%s2805_s2 + $0x70] sm:$0xff] }
  0x36   : > { %1864 = vmatpush3.bf16.msra.mxu0 %v401_v10  ;;  %1892 = vmatpush3.bf16.msra.mxu1 %v401_v10  ;;  %v686_v55 = vld [vmem:[%s2805_s2 + $0x20] sm:$0xff]  ;;  %v691_v58 = vld [vmem:[%s2805_s2 + $0x48] sm:$0xff]  ;;  %v709_v4 = vld [vmem:[%s2805_s2 + $0xd8] sm:$0xff]  ;;  %v409_v10 = vunpack.c.l.bf16 %v2279_v13 }
  0x37   : > { %1865 = vmatprep.subr.bf16.mxu0 %v2140_v7  ;;  %1893 = vmatprep.subr.bf16.mxu1 %v2140_v7  ;;  %v690_v59 = vld [vmem:[%s2805_s2 + $0x40] sm:$0xff]  ;;  %v695_v62 = vld [vmem:[%s2805_s2 + $0x68] sm:$0xff]  ;;  %v708_v5 = vld [vmem:[%s2805_s2 + $0xd0] sm:$0xff] }
  0x38   : > { %716 = vperm.xlu0 %1980, %v682_v51   ;;  %731 = vperm.xlu1 %1981, %v685_v52   ;;  %v694_v63 = vld [vmem:[%s2805_s2 + $0x60] sm:$0xff]  ;;  %v707_v2 = vld [vmem:[%s2805_s2 + $0xc8] sm:$0xff]  ;;  %v705_v51 = vld [vmem:[%s2805_s2 + $0xb8] sm:$0xff] }
  0x39   : > { %v706_v3 = vld [vmem:[%s2805_s2 + $0xc0] sm:$0xff]  ;;  %v711_v6 = vld [vmem:[%s2805_s2 + $0xe8] sm:$0xff]  ;;  %v704_v52 = vld [vmem:[%s2805_s2 + $0xb0] sm:$0xff] }
  0x3a   : > { %1866 = vmatpush3.bf16.msra.mxu0 %v402_v11  ;;  %1894 = vmatpush3.bf16.msra.mxu1 %v402_v11  ;;  %v410_v11 = vunpack.c.h.bf16 %v2279_v13 }
  0x3b   : > { %1867 = vmatprep.subr.bf16.mxu0 %v2140_v7  ;;  %1895 = vmatprep.subr.bf16.mxu1 %v2140_v7 }
  0x3c   : > { %721 = vperm.xlu0 %1980, %v683_v53   ;;  %741 = vperm.xlu1 %1981, %v687_v54  }
  0x3e   : > { %1868 = vmatpush3.bf16.msra.mxu0 %v403_v12  ;;  %1896 = vmatpush3.bf16.msra.mxu1 %v403_v12 }
  0x3f   : > { %1067 = vmatprep.subr.bf16.mxu0 %v2142_v8  ;;  %1917 = vmatprep.subr.bf16.mxu1 %v2142_v8 }
  0x40   : > { %736 = vperm.xlu0 %1980, %v686_v55   ;;  %751 = vperm.xlu1 %1981, %v689_v56  }
  0x41   : > { %1870 = vmatmul.mubr.msk.bf16.vlgmr.msra.gmra.mrb[0].mxu0 %vm391_vm1, %v2279_v13 }
  0x42   : > { %1873 = vmatprep.mubr.msk.bf16.mxu0 %vm2141_vm2, %v2140_v7  ;;  %1068 = vmatpush1.bf16.msra.mxu0 %v2279_v13 }
  0x43   : > { %1069 = vmatprep.subr.bf16.mxu0 %v2142_v8 }
  0x44   : > { %746 = vperm.xlu0 %1980, %v688_v57   ;;  %761 = vperm.xlu1 %1981, %v691_v58   ;;  %v415_v57 = vunpack.c.l.bf16 %v2301_v16 }
  0x46   : > { %1070 = vmatpush1.bf16.msra.mxu0 %v2289_v14 }
  0x47   : > { %1071 = vmatprep.subr.bf16.mxu0 %v2142_v8 }
  0x48   : > { %756 = vperm.xlu0 %1980, %v690_v59   ;;  %771 = vperm.xlu1 %1981, %v693_v60   ;;  %v416_v60 = vunpack.c.h.bf16 %v2301_v16 }
  0x49   : > { %1874 = vmatmul.mubr.msk.bf16.gmra.mrb[4].mxu0 %vm391_vm1, %v2289_v14 }
  0x4a   : > { %1877 = vmatprep.mubr.msk.bf16.mxu0 %vm2141_vm2, %v2140_v7  ;;  %1072 = vmatpush1.bf16.msra.mxu0 %v2295_v15 }
  0x4b   : > { %1073 = vmatprep.subr.bf16.mxu0 %v2142_v8 }
  0x4c   : > { %766 = vperm.xlu0 %1980, %v692_v61   ;;  %781 = vperm.xlu1 %1981, %v695_v62  }
  0x4e   : > { %1074 = vmatpush1.bf16.msra.mxu0 %v2301_v16 }
  0x4f   : > { %1075 = vmatprep.subr.bf16.mxu0 %v2142_v8 }
  0x50   : > { %776 = vperm.xlu0 %1980, %v694_v63   ;;  %791 = vperm.xlu1 %1981, %v697_v0  }
  0x51   : > { %1878 = vmatmul.mubr.msk.bf16.gmra.mrb[8].mxu0 %vm391_vm1, %v2295_v15 }
  0x52   : > { %1881 = vmatprep.mubr.msk.bf16.mxu0 %vm2141_vm2, %v2140_v7  ;;  %1076 = vmatpush1.bf16.msra.mxu0 %v2307_v17 }
  0x53   : > { %1077 = vmatprep.subr.bf16.mxu0 %v2142_v8 }
  0x54   : > { %786 = vperm.xlu0 %1980, %v696_v1   ;;  %841 = vperm.xlu1 %1981, %v707_v2  }
  0x58   : > { %836 = vperm.xlu0 %1980, %v706_v3   ;;  %851 = vperm.xlu1 %1981, %v709_v4  }
  0x59   : > { %1882 = vmatmul.mubr.msk.bf16.gmra.mrb[12].mxu0 %vm391_vm1, %v2301_v16 }
  0x5a   : > { %1885 = vmatprep.mubr.msk.bf16.mxu0 %vm2141_vm2, %v2140_v7 }
  0x5c   : > { %846 = vperm.xlu0 %1980, %v708_v5   ;;  %861 = vperm.xlu1 %1981, %v711_v6   ;;  %v417_v5 = vunpack.c.l.bf16 %v2307_v17 }
  0x61   : > { %1886 = vmatmul.mubr.msk.bf16.gmra.mrb[16].mxu0 %vm391_vm1, %v2307_v17 }
  0x62   : > { %1799 = vmatprep.mubr.msk.bf16.mxu0 %vm1018_vm3, %v1984_v48 }
 0x114   : > { %v468_v18 = vpop.f32.mrb[0].mxu0 }
 0x115   : > { %v1871_v19 = vpop.f32.mrb[1].mxu0 }
 0x116   : > { %v471_v20 = vpop.f32.mrb[2].mxu0 }
 0x117   : > { %v507_v21 = vpack.c.bf16 %v471_v20, %v468_v18  ;;  %v1872_v22 = vpop.f32.mrb[3].mxu0  ;;  %v713_v20 = vld [vmem:[%s2805_s2 + $0xf8] sm:$0xff] }
 0x118   : > { %871 = vperm.xlu1 %1981, %v713_v20  }
 0x119   : > { %512 = vst.msk [vmem:[#allocation4 + $0x28] sm:$0xff] %vm391_vm1, %v507_v21  ;;  %1898 = vmatmul.mubr.msk.bf16.vlgmr.msra.gmra.mrb[0].mxu1 %vm391_vm1, %v507_v21  ;;  %v712_v21 = vld [vmem:[%s2805_s2 + $0xf0] sm:$0xff] }
 0x11a   : > { %1932 = vmatpush1.bf16.msra.mxu1 %v2279_v13  ;;  %1901 = vmatprep.mubr.msk.bf16.mxu1 %vm2141_vm2, %v2140_v7  ;;  %v699_v13 = vld [vmem:[%s2805_s2 + $0x88] sm:$0xff] }
 0x11b   : > { %1918 = vmatprep.subr.bf16.mxu1 %v2142_v8 }
 0x11c   : > { %v476_v23 = vpop.f32.mrb[4].mxu0  ;;  %801 = vperm.xlu1 %1981, %v699_v13   ;;  %v1994_v13 = vld [vmem:[%s2804_s1 + $0x24] ss:$8 sps:$4 sm:$0xff]  }
 0x11d   : > { %v1875_v24 = vpop.f32.mrb[5].mxu0 }
 0x11e   : > { %1933 = vmatpush1.bf16.msra.mxu1 %v2289_v14  ;;  %v479_v25 = vpop.f32.mrb[6].mxu0 }
 0x11f   : > { %v508_v26 = vpack.c.bf16 %v479_v25, %v476_v23  ;;  %v1876_v27 = vpop.f32.mrb[7].mxu0  ;;  %1919 = vmatprep.subr.bf16.mxu1 %v2142_v8 }
 0x120   : > { %v672_v28 = vld [vmem:[#allocation4 + $0x28] sm:$0xff] }
 0x121   : > { %513 = vst.msk [vmem:[#allocation4 + $0x30] sm:$0xff] %vm391_vm1, %v508_v26  ;;  %1902 = vmatmul.mubr.msk.bf16.gmra.mrb[4].mxu1 %vm391_vm1, %v508_v26  ;;  %1078 = vmatpush1.bf16.msra.mxu0 %v672_v28  ;;  %v698_v26 = vld [vmem:[%s2805_s2 + $0x80] sm:$0xff] }
 0x122   : > { %1934 = vmatpush1.bf16.msra.mxu1 %v2295_v15  ;;  %1905 = vmatprep.mubr.msk.bf16.mxu1 %vm2141_vm2, %v2140_v7 }
 0x123   : > { %1920 = vmatprep.subr.bf16.mxu1 %v2142_v8  ;;  %1079 = vmatprep.subr.bf16.mxu0 %v2142_v8 }
 0x124   : > { %v484_v29 = vpop.f32.mrb[8].mxu0 }
 0x125   : > { %v1879_v30 = vpop.f32.mrb[9].mxu0 }
 0x126   : > { %1935 = vmatpush1.bf16.msra.mxu1 %v2301_v16  ;;  %v487_v31 = vpop.f32.mrb[10].mxu0  ;;  %v418_v16 = vunpack.c.h.bf16 %v2307_v17 }
 0x127   : > { %v509_v32 = vpack.c.bf16 %v487_v31, %v484_v29  ;;  %v1880_v33 = vpop.f32.mrb[11].mxu0  ;;  %1921 = vmatprep.subr.bf16.mxu1 %v2142_v8  ;;  %v411_v29 = vunpack.c.l.bf16 %v2289_v14 }
 0x128   : > { %v673_v34 = vld [vmem:[#allocation4 + $0x30] sm:$0xff] }
 0x129   : > { %514 = vst.msk [vmem:[#allocation4 + $0x38] sm:$0xff] %vm391_vm1, %v509_v32  ;;  %1906 = vmatmul.mubr.msk.bf16.gmra.mrb[8].mxu1 %vm391_vm1, %v509_v32  ;;  %1080 = vmatpush1.bf16.msra.mxu0 %v673_v34  ;;  %v412_v32 = vunpack.c.h.bf16 %v2289_v14 }
 0x12a   : > { %1936 = vmatpush1.bf16.msra.mxu1 %v2307_v17  ;;  %1909 = vmatprep.mubr.msk.bf16.mxu1 %vm2141_vm2, %v2140_v7 }
 0x12b   : > { %1922 = vmatprep.subr.bf16.mxu1 %v2142_v8  ;;  %1081 = vmatprep.subr.bf16.mxu0 %v2142_v8 }
 0x12c   : > { %v492_v35 = vpop.f32.mrb[12].mxu0 }
 0x12d   : > { %v1883_v36 = vpop.f32.mrb[13].mxu0 }
 0x12e   : > { %1937 = vmatpush1.bf16.msra.mxu1 %v672_v28  ;;  %v495_v37 = vpop.f32.mrb[14].mxu0 }
 0x12f   : > { %v510_v38 = vpack.c.bf16 %v495_v37, %v492_v35  ;;  %v1884_v39 = vpop.f32.mrb[15].mxu0  ;;  %1923 = vmatprep.subr.bf16.mxu1 %v2142_v8  ;;  %v700_v35 = vld [vmem:[%s2805_s2 + $0x90] sm:$0xff] }
 0x130   : > { %v674_v40 = vld [vmem:[#allocation4 + $0x38] sm:$0xff] }
 0x131   : > { %515 = vst.msk [vmem:[#allocation4 + $0x40] sm:$0xff] %vm391_vm1, %v510_v38  ;;  %1910 = vmatmul.mubr.msk.bf16.gmra.mrb[12].mxu1 %vm391_vm1, %v510_v38  ;;  %1082 = vmatpush1.bf16.msra.mxu0 %v674_v40 }
 0x132   : > { %1938 = vmatpush1.bf16.msra.mxu1 %v673_v34  ;;  %1913 = vmatprep.mubr.msk.bf16.mxu1 %vm2141_vm2, %v2140_v7  ;;  %v710_v7 = vld [vmem:[%s2805_s2 + $0xe0] sm:$0xff]  ;;  %v701_v34 = vld [vmem:[%s2805_s2 + $0x98] sm:$0xff] }
 0x133   : > { %1924 = vmatprep.subr.bf16.mxu1 %v2142_v8  ;;  %1083 = vmatprep.subr.bf16.mxu0 %v2142_v8 }
 0x134   : > { %v500_v41 = vpop.f32.mrb[16].mxu0  ;;  %856 = vperm.xlu0 %1980, %v710_v7   ;;  %811 = vperm.xlu1 %1981, %v701_v34   ;;  %v2008_v34 = vld [vmem:[%s2804_s1 + $0xc4] ss:$8 sps:$4 sm:$0xff]  }
 0x135   : > { %v1887_v42 = vpop.f32.mrb[17].mxu0 }
 0x136   : > { %1939 = vmatpush1.bf16.msra.mxu1 %v674_v40  ;;  %v503_v43 = vpop.f32.mrb[18].mxu0  ;;  %v703_v42 = vld [vmem:[%s2805_s2 + $0xa8] sm:$0xff] }
 0x137   : > { %v511_v44 = vpack.c.bf16 %v503_v43, %v500_v41  ;;  %v1888_v45 = vpop.f32.mrb[19].mxu0  ;;  %1925 = vmatprep.subr.bf16.mxu1 %v2142_v8  ;;  %v702_v43 = vld [vmem:[%s2805_s2 + $0xa0] sm:$0xff] }
 0x138   : > { %v675_v46 = vld [vmem:[#allocation4 + $0x40] sm:$0xff]  ;;  %866 = vperm.xlu0 %1980, %v712_v21   ;;  %821 = vperm.xlu1 %1981, %v703_v42  }
 0x139   : > { %516 = vst.msk [vmem:[#allocation4 + $0x48] sm:$0xff] %vm391_vm1, %v511_v44  ;;  %1914 = vmatmul.mubr.msk.bf16.gmra.mrb[16].mxu1 %vm391_vm1, %v511_v44  ;;  %1084 = vmatpush1.bf16.msra.mxu0 %v675_v46  ;;  %v413_v44 = vunpack.c.l.bf16 %v2295_v15  ;;  %v1982_v21 = vld [vmem:[%s2804_s1] ss:$8 sps:$4 sm:$0xff]  }
 0x13a   : > { %1940 = vmatpush1.bf16.msra.mxu1 %v675_v46  ;;  %1085 = vmatprep.subr.bf16.mxu0 %v2142_v8  ;;  %v2022_v42 = vld [vmem:[%s2804_s1 + $0x60] ss:$8 sps:$4 sm:$0xff]  }
 0x13b   : > { %1926 = vmatprep.subr.bf16.mxu1 %v2142_v8  ;;  %1807 = vmatprep.mubr.msk.bf16.mxu1 %vm1018_vm3, %v1987_v49 }
 0x13c   : > { %796 = vperm.xlu0 %1980, %v698_v26   ;;  %831 = vperm.xlu1 %1981, %v705_v51   ;;  %v1996_v26 = vld [vmem:[%s2804_s1 + $0xa4] ss:$8 sps:$4 sm:$0xff]  }
 0x140   : > { %v676_v47 = vld [vmem:[#allocation4 + $0x48] sm:$0xff]  ;;  %806 = vperm.xlu0 %1980, %v700_v35  }
 0x141   : > { %1086 = vmatpush1.bf16.msra.mxu0 %v676_v47  ;;  %1941 = vmatpush1.bf16.msra.mxu1 %v676_v47  ;;  %v414_v47 = vunpack.c.h.bf16 %v2295_v15  ;;  %v2010_v35 = vld [vmem:[%s2804_s1 + $0x40] ss:$8 sps:$4 sm:$0xff]  }
 0x142   : > { %1087 = vmatprep.subr.bf16.mxu0 %v2142_v8  ;;  %1927 = vmatprep.subr.bf16.mxu1 %v2142_v8 }
 0x144   : > { %816 = vperm.xlu0 %1980, %v702_v43   ;;  %v2023_v43 = vld [vmem:[%s2804_s1 + $0xe0] ss:$8 sps:$4 sm:$0xff]  }
 0x148   : > { %826 = vperm.xlu0 %1980, %v704_v52  }
 0x1ec   : > { %v566_v9 = vpop.f32.mrb[0].mxu1 }
 0x1ed   : > { %v605_v12 = vmul.f32 2.0, %v566_v9  ;;  %v1899_v18 = vpop.f32.mrb[1].mxu1 }
 0x1ee   : > { %v569_v19 = vpop.f32.mrb[2].mxu1 }
 0x1ef   : > { %v606_v22 = vmul.f32 2.0, %v569_v19  ;;  %v1900_v23 = vpop.f32.mrb[3].mxu1  ;;  %v615_v24 = vsub.f32 %v605_v12, %v409_v10 }
 0x1f0   : > { %v1988_v23 = vld [vmem:[%s2804_s1 + $0x14] ss:$8 sps:$4 sm:$0xff]  }
 0x1f1   : > { %v616_v25 = vsub.f32 %v606_v22, %v410_v11  ;;  %v1985_v22 = vld [vmem:[%s2804_s1 + $0x80] ss:$8 sps:$4 sm:$0xff]  }
 0x1f3   : > { %v625_v27 = vpack.c.bf16 %v616_v25, %v615_v24  ;;  %v1990_v24 = vld [vmem:[%s2804_s1 + $0x94] ss:$8 sps:$4 sm:$0xff]   ;;  %v1993_v25 = vld [vmem:[%s2804_s1 + $0x90] ss:$8 sps:$4 sm:$0xff]  }
 0x1f4   : > { %v574_v28 = vpop.f32.mrb[4].mxu1 }
 0x1f5   : > { %630 = vst.msk [vmem:[#allocation4 + $0x50] sm:$0xff] %vm391_vm1, %v625_v27  ;;  %v607_v30 = vmul.f32 2.0, %v574_v28  ;;  %v1903_v31 = vpop.f32.mrb[5].mxu1  ;;  %v1998_v27 = vld [vmem:[%s2804_s1 + $0x20] ss:$8 sps:$4 sm:$0xff]  }
 0x1f6   : > { %v577_v33 = vpop.f32.mrb[6].mxu1  ;;  %v1999_v28 = vld [vmem:[%s2804_s1 + $0xa0] ss:$8 sps:$4 sm:$0xff]   ;;  %v2004_v31 = vld [vmem:[%s2804_s1 + $0x30] ss:$8 sps:$4 sm:$0xff]  }
 0x1f7   : > { %v608_v36 = vmul.f32 2.0, %v577_v33  ;;  %v1904_v37 = vpop.f32.mrb[7].mxu1  ;;  %v617_v38 = vsub.f32 %v607_v30, %v411_v29  ;;  %v2000_v29 = vld [vmem:[%s2804_s1 + $0x34] ss:$8 sps:$4 sm:$0xff]   ;;  %v2006_v33 = vld [vmem:[%s2804_s1 + $0x44] ss:$8 sps:$4 sm:$0xff]  }
 0x1f8   : > { %v2002_v30 = vld [vmem:[%s2804_s1 + $0xb4] ss:$8 sps:$4 sm:$0xff]  }
 0x1f9   : > { %v618_v39 = vsub.f32 %v608_v36, %v412_v32  ;;  %v2005_v32 = vld [vmem:[%s2804_s1 + $0xb0] ss:$8 sps:$4 sm:$0xff]   ;;  %v2011_v36 = vld [vmem:[%s2804_s1 + $0xc0] ss:$8 sps:$4 sm:$0xff]   ;;  %v2012_v37 = vld [vmem:[%s2804_s1 + $0x54] ss:$8 sps:$4 sm:$0xff]  }
 0x1fb   : > { %v626_v40 = vpack.c.bf16 %v618_v39, %v617_v38  ;;  %v2014_v38 = vld [vmem:[%s2804_s1 + $0xd4] ss:$8 sps:$4 sm:$0xff]   ;;  %v2016_v39 = vld [vmem:[%s2804_s1 + $0x50] ss:$8 sps:$4 sm:$0xff]  }
 0x1fc   : > { %v582_v41 = vpop.f32.mrb[8].mxu1  ;;  %v677_v14 = vld [vmem:[#allocation4 + $0x50] sm:$0xff] }
 0x1fd   : > { %631 = vst.msk [vmem:[#allocation4 + $0x58] sm:$0xff] %vm391_vm1, %v626_v40  ;;  %v609_v45 = vmul.f32 2.0, %v582_v41  ;;  %v1907_v46 = vpop.f32.mrb[9].mxu1  ;;  %1088 = vmatpush1.bf16.msra.mxu0 %v677_v14  ;;  %1942 = vmatpush1.bf16.msra.mxu1 %v677_v14  ;;  %v2017_v40 = vld [vmem:[%s2804_s1 + $0xd0] ss:$8 sps:$4 sm:$0xff]  }
 0x1fe   : > { %v585_v48 = vpop.f32.mrb[10].mxu1  ;;  %1089 = vmatprep.subr.bf16.mxu0 %v2142_v8  ;;  %1928 = vmatprep.subr.bf16.mxu1 %v2142_v8  ;;  %v2018_v41 = vld [vmem:[%s2804_s1 + $0x64] ss:$8 sps:$4 sm:$0xff]   ;;  %v2028_v46 = vld [vmem:[%s2804_s1 + $0x70] ss:$8 sps:$4 sm:$0xff]  }
 0x1ff   : > { %v610_v49 = vmul.f32 2.0, %v585_v48  ;;  %v1908_v50 = vpop.f32.mrb[11].mxu1  ;;  %v619_v53 = vsub.f32 %v609_v45, %v413_v44  ;;  %v2020_v14 = vld [vmem:[%s2804_s1 + $0xe4] ss:$8 sps:$4 sm:$0xff]   ;;  %v2024_v44 = vld [vmem:[%s2804_s1 + $0x74] ss:$8 sps:$4 sm:$0xff]   ;;  %v717_v48 = vpop.permute.xlu0 %716 }
 0x200   : > { %v2026_v45 = vld [vmem:[%s2804_s1 + $0xf4] ss:$8 sps:$4 sm:$0xff]  }
 0x201   : > { %v620_v54 = vsub.f32 %v610_v49, %v414_v47  ;;  %v2029_v47 = vld [vmem:[%s2804_s1 + $0xf0] ss:$8 sps:$4 sm:$0xff]   ;;  %v727_v49 = vpop.permute.xlu1 %726 }
 0x203   : > { %v627_v15 = vpack.c.bf16 %v620_v54, %v619_v53  ;;  %v722_v50 = vpop.permute.xlu0 %721 }
 0x204   : > { %v590_v55 = vpop.f32.mrb[12].mxu1  ;;  %v678_v56 = vld [vmem:[#allocation4 + $0x58] sm:$0xff] }
 0x205   : > { %632 = vst.msk [vmem:[#allocation4 + $0x60] sm:$0xff] %vm391_vm1, %v627_v15  ;;  %v611_v58 = vmul.f32 2.0, %v590_v55  ;;  %v1911_v59 = vpop.f32.mrb[13].mxu1  ;;  %1090 = vmatpush1.bf16.msra.mxu0 %v678_v56  ;;  %1943 = vmatpush1.bf16.msra.mxu1 %v678_v56  ;;  %v732_v51 = vpop.permute.xlu1 %731 }
 0x206   : > { %v593_v61 = vpop.f32.mrb[14].mxu1  ;;  %1091 = vmatprep.subr.bf16.mxu0 %v2142_v8  ;;  %1929 = vmatprep.subr.bf16.mxu1 %v2142_v8 }
 0x207   : > { %v612_v62 = vmul.f32 2.0, %v593_v61  ;;  %v1912_v63 = vpop.f32.mrb[15].mxu1  ;;  %v621_v0 = vsub.f32 %v611_v58, %v415_v57  ;;  %v2588_v52 = vpop.permute.xlu0 %736 }
 0x209   : > { %v622_v1 = vsub.f32 %v612_v62, %v416_v60  ;;  %v2590_v53 = vpop.permute.xlu1 %741 }
 0x20b   : > { %v628_v2 = vpack.c.bf16 %v622_v1, %v621_v0  ;;  %v2592_v54 = vpop.permute.xlu0 %746 }
 0x20c   : > { %v598_v3 = vpop.f32.mrb[16].mxu1  ;;  %v679_v4 = vld [vmem:[#allocation4 + $0x60] sm:$0xff] }
 0x20d   : > { %633 = vst.msk [vmem:[#allocation4 + $0x68] sm:$0xff] %vm391_vm1, %v628_v2  ;;  %v613_v6 = vmul.f32 2.0, %v598_v3  ;;  %v1915_v7 = vpop.f32.mrb[17].mxu1  ;;  %1092 = vmatpush1.bf16.msra.mxu0 %v679_v4  ;;  %1944 = vmatpush1.bf16.msra.mxu1 %v679_v4  ;;  %v2594_v15 = vpop.permute.xlu1 %751 }
 0x20e   : > { %v601_v9 = vpop.f32.mrb[18].mxu1  ;;  %1093 = vmatprep.subr.bf16.mxu0 %v2142_v8  ;;  %1930 = vmatprep.subr.bf16.mxu1 %v2142_v8 }
 0x20f   : > { %v614_v10 = vmul.f32 2.0, %v601_v9  ;;  %v1916_v11 = vpop.f32.mrb[19].mxu1  ;;  %v623_v12 = vsub.f32 %v613_v6, %v417_v5  ;;  %v2596_v55 = vpop.permute.xlu0 %756 }
 0x211   : > { %v624_v18 = vsub.f32 %v614_v10, %v418_v16  ;;  %v2598_v56 = vpop.permute.xlu1 %761 }
 0x213   : > { %v629_v19 = vpack.c.bf16 %v624_v18, %v623_v12  ;;  %v2600_v57 = vpop.permute.xlu0 %766 }
 0x214   : > { %v680_v20 = vld [vmem:[#allocation4 + $0x68] sm:$0xff] }
 0x215   : > { %634 = vst.msk [vmem:[#allocation4 + $0x70] sm:$0xff] %vm391_vm1, %v629_v19  ;;  %1094 = vmatpush1.bf16.msra.mxu0 %v680_v20  ;;  %1945 = vmatpush1.bf16.msra.mxu1 %v680_v20  ;;  %v2602_v58 = vpop.permute.xlu1 %771 }
 0x216   : > { %1095 = vmatprep.subr.bf16.mxu0 %v2142_v8  ;;  %1931 = vmatprep.subr.bf16.mxu1 %v2142_v8  ;;  %v1992_v8 = vld [vmem:[%s2804_s1 + $0x10] ss:$8 sps:$4 sm:$0xff]  }
 0x217   : > { %v2604_v59 = vpop.permute.xlu0 %776 }
 0x219   : > { %v2606_v60 = vpop.permute.xlu1 %781 }
 0x21b   : > { %v2608_v61 = vpop.permute.xlu0 %786 }
 0x21c   : > { %v681_v17 = vld [vmem:[#allocation4 + $0x70] sm:$0xff] }
 0x21d   : > { %1096 = vmatpush1.bf16.msra.mxu0 %v681_v17  ;;  %1946 = vmatpush1.bf16.msra.mxu1 %v681_v17  ;;  %v2610_v62 = vpop.permute.xlu1 %791 }
 0x21f   : > { %v837_v63 = vpop.permute.xlu0 %836 }
 0x220   : > { %1100 = vmatmul.mubr.bf16.vlgmr.msra.gmra.mrb[20].mxu0 %v1982_v21  ;;  %1164 = vmatmul.mubr.bf16.vlgmr.msra.gmra.mrb[20].mxu1 %v1985_v22 }
 0x221   : > { %1800 = vmatprep.mubr.msk.bf16.mxu0 %vm1018_vm3, %v1988_v23  ;;  %1808 = vmatprep.mubr.msk.bf16.mxu1 %vm1018_vm3, %v1990_v24  ;;  %v2612_v0 = vpop.permute.xlu1 %841 }
 0x223   : > { %v2614_v1 = vpop.permute.xlu0 %846 }
 0x225   : > { %v2616_v10 = vpop.permute.xlu1 %851 }
 0x227   : > { %v2618_v11 = vpop.permute.xlu0 %856 }
 0x228   : > { %1108 = vmatmul.mubr.bf16.gmra.mrb[24].mxu0 %v1992_v8  ;;  %1172 = vmatmul.mubr.bf16.gmra.mrb[24].mxu1 %v1993_v25 }
 0x229   : > { %1801 = vmatprep.mubr.msk.bf16.mxu0 %vm1018_vm3, %v1994_v13  ;;  %1809 = vmatprep.mubr.msk.bf16.mxu1 %vm1018_vm3, %v1996_v26  ;;  %v2624_v24 = vpop.permute.xlu1 %861 }
 0x22b   : > { %v2626_v8 = vpop.permute.xlu0 %866 }
 0x230   : > { %1116 = vmatmul.mubr.bf16.gmra.mrb[28].mxu0 %v1998_v27  ;;  %1180 = vmatmul.mubr.bf16.gmra.mrb[28].mxu1 %v1999_v28 }
 0x231   : > { %1802 = vmatprep.mubr.msk.bf16.mxu0 %vm1018_vm3, %v2000_v29  ;;  %1810 = vmatprep.mubr.msk.bf16.mxu1 %vm1018_vm3, %v2002_v30 }
 0x238   : > { %1124 = vmatmul.mubr.bf16.gmra.mrb[32].mxu0 %v2004_v31  ;;  %1188 = vmatmul.mubr.bf16.gmra.mrb[32].mxu1 %v2005_v32 }
 0x239   : > { %1803 = vmatprep.mubr.msk.bf16.mxu0 %vm1018_vm3, %v2006_v33  ;;  %1811 = vmatprep.mubr.msk.bf16.mxu1 %vm1018_vm3, %v2008_v34 }
 0x240   : > { %1132 = vmatmul.mubr.bf16.gmra.mrb[36].mxu0 %v2010_v35  ;;  %1196 = vmatmul.mubr.bf16.gmra.mrb[36].mxu1 %v2011_v36  ;;  %v2632_v35 = vpop.permute.xlu1 %871  ;;  %v797_v36 = vpop.permute.xlu0 %796 }
 0x241   : > { %1804 = vmatprep.mubr.msk.bf16.mxu0 %vm1018_vm3, %v2012_v37  ;;  %1812 = vmatprep.mubr.msk.bf16.mxu1 %vm1018_vm3, %v2014_v38 }
 0x248   : > { %1140 = vmatmul.mubr.bf16.gmra.mrb[40].mxu0 %v2016_v39  ;;  %1204 = vmatmul.mubr.bf16.gmra.mrb[40].mxu1 %v2017_v40 }
 0x249   : > { %1805 = vmatprep.mubr.msk.bf16.mxu0 %vm1018_vm3, %v2018_v41  ;;  %1813 = vmatprep.mubr.msk.bf16.mxu1 %vm1018_vm3, %v2020_v14 }
 0x250   : > { %1148 = vmatmul.mubr.bf16.gmra.mrb[44].mxu0 %v2022_v42  ;;  %1212 = vmatmul.mubr.bf16.gmra.mrb[44].mxu1 %v2023_v43 }
 0x251   : > { %1806 = vmatprep.mubr.msk.bf16.mxu0 %vm1018_vm3, %v2024_v44  ;;  %1814 = vmatprep.mubr.msk.bf16.mxu1 %vm1018_vm3, %v2026_v45 }
 0x258   : > { %1156 = vmatmul.mubr.bf16.gmra.mrb[48].mxu0 %v2028_v46  ;;  %1220 = vmatmul.mubr.bf16.gmra.mrb[48].mxu1 %v2029_v47 }
 0x2f3   : > { %v1101_v2 = vpop.f32.mrb[20].mxu0  ;;  %v1165_v3 = vpop.f32.mrb[20].mxu1 }
 0x2f4   : > { %v1103_v4 = vpop.f32.mrb[21].mxu0  ;;  %v1167_v5 = vpop.f32.mrb[21].mxu1  ;;  %v1102_v28 = vadd.f32 %v1101_v2, %v717_v48  ;;  %v1166_v39 = vadd.f32 %v1165_v3, %v797_v36 }
 0x2f5   : > { %v1104_v6 = vpop.f32.mrb[22].mxu0  ;;  %v1168_v7 = vpop.f32.mrb[22].mxu1 }
 0x2f6   : > { %v1106_v16 = vpop.f32.mrb[23].mxu0  ;;  %v1170_v9 = vpop.f32.mrb[23].mxu1  ;;  %v1228_v33 = vmul.f32 0.5, %v1102_v28  ;;  %v1105_v34 = vadd.f32 %v1104_v6, %v722_v50  ;;  %v1292_v48 = vmul.f32 0.5, %v1166_v39 }
 0x2f7   : > { %v802_v2 = vpop.permute.xlu1 %801 }
 0x2f8   : > { %2030 = vtanh.f32 %v1228_v33  ;;  %v1229_v14 = vmul.f32 0.5, %v1105_v34  ;;  %v1169_v3 = vadd.f32 %v1168_v7, %v802_v2 }
 0x2fa   : > { %2032 = vtanh.f32 %v1229_v14  ;;  %v1293_v28 = vmul.f32 0.5, %v1169_v3 }
 0x2fb   : > { %v1109_v12 = vpop.f32.mrb[24].mxu0  ;;  %v2620_v18 = vpop.f32.mrb[24].mxu1  ;;  %2034 = vtanh.f32 %v1292_v48 }
 0x2fc   : > { %v1111_v19 = vpop.f32.mrb[25].mxu0  ;;  %v1175_v20 = vpop.f32.mrb[25].mxu1  ;;  %v1110_v42 = vadd.f32 %v1109_v12, %v727_v49 }
 0x2fd   : > { %v1112_v17 = vpop.f32.mrb[26].mxu0  ;;  %v2622_v21 = vpop.f32.mrb[26].mxu1 }
 0x2fe   : > { %v1114_v22 = vpop.f32.mrb[27].mxu0  ;;  %v1178_v23 = vpop.f32.mrb[27].mxu1  ;;  %v1113_v47 = vadd.f32 %v1112_v17, %v732_v51  ;;  %v1230_v50 = vmul.f32 0.5, %v1110_v42 }
 0x2ff   : > { %v812_v33 = vpop.permute.xlu1 %811 }
 0x300   : > { %v1231_v4 = vmul.f32 0.5, %v1113_v47  ;;  %2036 = vtanh.f32 %v1230_v50 }
 0x303   : > { %v1117_v25 = vpop.f32.mrb[28].mxu0  ;;  %v2628_v13 = vpop.f32.mrb[28].mxu1 }
 0x304   : > { %v1119_v26 = vpop.f32.mrb[29].mxu0  ;;  %v1183_v27 = vpop.f32.mrb[29].mxu1  ;;  %v1118_v19 = vadd.f32 %v1117_v25, %v2588_v52 }
 0x305   : > { %v1120_v29 = vpop.f32.mrb[30].mxu0  ;;  %v2630_v30 = vpop.f32.mrb[30].mxu1 }
 0x306   : > { %v1122_v31 = vpop.f32.mrb[31].mxu0  ;;  %v1186_v32 = vpop.f32.mrb[31].mxu1  ;;  %v1121_v27 = vadd.f32 %v1120_v29, %v2590_v53  ;;  %v1232_v52 = vmul.f32 0.5, %v1118_v19  ;;  %v1177_v53 = vadd.f32 %v2622_v21, %v812_v33 }
 0x307   : > { %v2031_v26 = vpop.eup %2030 }
 0x308   : > { %v1244_v32 = vadd.f32 1.0, %v2031_v26  ;;  %v2033_v34 = vpop.eup %2032  ;;  %v1233_v36 = vmul.f32 0.5, %v1121_v27 }
 0x309   : > { %v1245_v48 = vadd.f32 1.0, %v2033_v34 }
 0x30a   : > { %v1252_v47 = vmul.f32 0.5, %v1244_v32 }
 0x30b   : > { %v1125_v37 = vpop.f32.mrb[32].mxu0  ;;  %v2634_v38 = vpop.f32.mrb[32].mxu1 }
 0x30c   : > { %v1127_v40 = vpop.f32.mrb[33].mxu0  ;;  %v1191_v41 = vpop.f32.mrb[33].mxu1  ;;  %v1126_v14 = vadd.f32 %v1125_v37, %v2592_v54  ;;  %v1295_v54 = vmul.f32 0.5, %v1177_v53  ;;  %v1333_v53 = vld [vmem:[#allocation5 + $0x8] sm:$0xff] }
 0x30d   : > { %v2636_v43 = vpop.f32.mrb[34].mxu0  ;;  %v2638_v44 = vpop.f32.mrb[34].mxu1 }
 0x30e   : > { %v1130_v45 = vpop.f32.mrb[35].mxu0  ;;  %v1194_v46 = vpop.f32.mrb[35].mxu1  ;;  %v1234_v3 = vmul.f32 0.5, %v1126_v14 }
 0x30f   : > { %v2035_v46 = vpop.eup %2034 }
 0x310   : > { %v2037_v21 = vpop.eup %2036 }
 0x313   : > { %v1133_v5 = vpop.f32.mrb[36].mxu0  ;;  %v1197_v6 = vpop.f32.mrb[36].mxu1 }
 0x314   : > { %v1134_v16 = vadd.f32 %v1133_v5, %v2596_v55  ;;  %v1198_v9 = vadd.f32 %v1197_v6, %v837_v63  ;;  %v1135_v49 = vpop.f32.mrb[37].mxu0  ;;  %v1199_v12 = vpop.f32.mrb[37].mxu1 }
 0x315   : > { %v1136_v20 = vpop.f32.mrb[38].mxu0  ;;  %v1200_v22 = vpop.f32.mrb[38].mxu1  ;;  %v1253_v12 = vmul.f32 0.5, %v1245_v48 }
 0x316   : > { %v1260_v51 = vmul.f32 0.5, %v1134_v16  ;;  %2038 = vtanh.f32 %v1198_v9  ;;  %v1138_v17 = vpop.f32.mrb[39].mxu0  ;;  %v1202_v23 = vpop.f32.mrb[39].mxu1  ;;  %v1137_v7 = vadd.f32 %v1136_v20, %v2598_v56  ;;  %v1201_v55 = vadd.f32 %v1200_v22, %v2612_v0 }
 0x317   : > { %2040 = vtanh.f32 %v1231_v4  ;;  %v807_v63 = vpop.permute.xlu0 %806  ;;  %v1246_v20 = vadd.f32 1.0, %v2037_v21 }
 0x318   : > { %2042 = vtanh.f32 %v1260_v51  ;;  %v1174_v31 = vadd.f32 %v2620_v18, %v807_v63  ;;  %v1261_v25 = vmul.f32 0.5, %v1137_v7 }
 0x319   : > { %2044 = vtanh.f32 %v1201_v55  ;;  %v1308_v55 = vadd.f32 1.0, %v2035_v46 }
 0x31a   : > { %2046 = vtanh.f32 %v1261_v25  ;;  %v1294_v18 = vmul.f32 0.5, %v1174_v31 }
 0x31b   : > { %v1141_v39 = vpop.f32.mrb[40].mxu0  ;;  %v1205_v40 = vpop.f32.mrb[40].mxu1  ;;  %2048 = vtanh.f32 %v1293_v28 }
 0x31c   : > { %v1142_v56 = vadd.f32 %v1141_v39, %v2600_v57  ;;  %v1206_v0 = vadd.f32 %v1205_v40, %v2614_v1  ;;  %v1143_v29 = vpop.f32.mrb[41].mxu0  ;;  %v1207_v41 = vpop.f32.mrb[41].mxu1  ;;  %2050 = vtanh.f32 %v1232_v52  ;;  %v1129_v57 = vadd.f32 %v2636_v43, %v2594_v15 }
 0x31d   : > { %v1144_v42 = vpop.f32.mrb[42].mxu0  ;;  %v1208_v45 = vpop.f32.mrb[42].mxu1  ;;  %v1254_v40 = vmul.f32 0.5, %v1246_v20 }
 0x31e   : > { %v1262_v50 = vmul.f32 0.5, %v1142_v56  ;;  %2052 = vtanh.f32 %v1206_v0  ;;  %v1146_v2 = vpop.f32.mrb[43].mxu0  ;;  %v1210_v4 = vpop.f32.mrb[43].mxu1  ;;  %v1145_v1 = vadd.f32 %v1144_v42, %v2602_v58  ;;  %v1209_v5 = vadd.f32 %v1208_v45, %v2616_v10  ;;  %v1332_v10 = vld [vmem:[#allocation5] sm:$0xff] }
 0x31f   : > { %2054 = vtanh.f32 %v1233_v36  ;;  %v1235_v22 = vmul.f32 0.5, %v1129_v57  ;;  %v817_v14 = vpop.permute.xlu0 %816  ;;  %v2659_v4 = vmul.f32 0.5, %v1308_v55 }
 0x320   : > { %v2039_v6 = vpop.eup %2038  ;;  %2056 = vtanh.f32 %v1262_v50  ;;  %v1263_v9 = vmul.f32 0.5, %v1145_v1  ;;  %v1182_v48 = vadd.f32 %v2628_v13, %v817_v14 }
 0x321   : > { %v2041_v37 = vpop.eup %2040  ;;  %v1348_v16 = vmul.f32 %v2039_v6, %v1252_v47  ;;  %2058 = vtanh.f32 %v1209_v5 }
 0x322   : > { %v2043_v49 = vpop.eup %2042  ;;  %2060 = vtanh.f32 %v1294_v18  ;;  %v1247_v63 = vadd.f32 1.0, %v2041_v37 }
 0x323   : > { %v2045_v19 = vpop.eup %2044  ;;  %v1276_v51 = vadd.f32 1.0, %v2043_v49  ;;  %2062 = vtanh.f32 %v1263_v9  ;;  %v1149_v15 = vpop.f32.mrb[44].mxu0 }
 0x324   : > { %v1213_v58 = vpop.f32.mrb[44].mxu1  ;;  %2064 = vtanh.f32 %v1295_v54  ;;  %v1349_v43 = vmul.f32 %v2045_v19, %v1253_v12  ;;  %v1150_v17 = vadd.f32 %v1149_v15, %v2604_v59  ;;  %v1151_v26 = vpop.f32.mrb[45].mxu0  ;;  %v1255_v47 = vmul.f32 0.5, %v1247_v63  ;;  %v1334_v54 = vld [vmem:[#allocation5 + $0x10] sm:$0xff] }
 0x325   : > { %v1214_v23 = vadd.f32 %v1213_v58, %v2618_v11  ;;  %v1215_v27 = vpop.f32.mrb[45].mxu1  ;;  %v2047_v7 = vpop.eup %2046  ;;  %2066 = vtanh.f32 %v1234_v3  ;;  %v1284_v28 = vmul.f32 0.5, %v1276_v51  ;;  %v1296_v63 = vmul.f32 0.5, %v1182_v48 }
 0x326   : > { %v1152_v31 = vpop.f32.mrb[46].mxu0  ;;  %v1216_v52 = vpop.f32.mrb[46].mxu1  ;;  %v1277_v32 = vadd.f32 1.0, %v2047_v7  ;;  %v1264_v33 = vmul.f32 0.5, %v1150_v17  ;;  %v1335_v7 = vld [vmem:[#allocation5 + $0x18] sm:$0xff] }
 0x327   : > { %v2049_v25 = vpop.eup %2048  ;;  %2068 = vtanh.f32 %v1214_v23  ;;  %v1153_v34 = vadd.f32 %v1152_v31, %v2606_v60  ;;  %v1154_v36 = vpop.f32.mrb[47].mxu0  ;;  %v1340_v11 = vmul.f32 %v1332_v10, %v1284_v28  ;;  %v1217_v56 = vadd.f32 %v1216_v52, %v2624_v24 }
 0x328   : > { %v1218_v39 = vpop.f32.mrb[47].mxu1  ;;  %v2051_v59 = vpop.eup %2050  ;;  %2070 = vtanh.f32 %v1235_v22  ;;  %v1285_v29 = vmul.f32 0.5, %v1277_v32  ;;  %v1309_v12 = vadd.f32 1.0, %v2049_v25 }
 0x329   : > { %v2053_v0 = vpop.eup %2052  ;;  %2072 = vtanh.f32 %v1264_v33  ;;  %v1265_v41 = vmul.f32 0.5, %v1153_v34  ;;  %v1356_v42 = vadd.f32 %v1348_v16, %v1340_v11  ;;  %v822_v60 = vpop.permute.xlu1 %821  ;;  %v1248_v24 = vadd.f32 1.0, %v2051_v59 }
 0x32a   : > { %v2055_v18 = vpop.eup %2054  ;;  %v1350_v45 = vmul.f32 %v2053_v0, %v1254_v40  ;;  %2074 = vtanh.f32 %v1217_v56  ;;  %v1341_v50 = vmul.f32 %v1333_v53, %v1285_v29  ;;  %v1185_v20 = vadd.f32 %v2630_v30, %v822_v60  ;;  %v827_v25 = vpop.permute.xlu0 %826 }
 0x32b   : > { %v2057_v46 = vpop.eup %2056  ;;  %2076 = vtanh.f32 %v1265_v41  ;;  %1380 = vst.msk [vmem:[#allocation5] sm:$0xff] %vm391_vm1, %v1356_v42  ;;  %v1157_v57 = vpop.f32.mrb[48].mxu0  ;;  %v1249_v19 = vadd.f32 1.0, %v2055_v18  ;;  %v1256_v26 = vmul.f32 0.5, %v1248_v24  ;;  %v1190_v39 = vadd.f32 %v2634_v38, %v827_v25  ;;  %v1336_v18 = vld [vmem:[#allocation5 + $0x20] sm:$0xff] }
 0x32c   : > { %v2059_v2 = vpop.eup %2058  ;;  %2078 = vtanh.f32 %v1356_v42  ;;  %v1278_v21 = vadd.f32 1.0, %v2057_v46  ;;  %v1221_v1 = vpop.f32.mrb[48].mxu1  ;;  %v1357_v6 = vadd.f32 %v1349_v43, %v1341_v50  ;;  %v1158_v3 = vadd.f32 %v1157_v57, %v2608_v61  ;;  %v1458_v57 = vld [vmem:[#allocation7] sm:$0xff] }
 0x32d   : > { %v2061_v5 = vpop.eup %2060  ;;  %v1351_v37 = vmul.f32 %v2059_v2, %v1255_v47  ;;  %v1222_v13 = vadd.f32 %v1221_v1, %v2626_v8  ;;  %v1159_v16 = vpop.f32.mrb[49].mxu0  ;;  %v1297_v32 = vmul.f32 0.5, %v1185_v20  ;;  %v1257_v36 = vmul.f32 0.5, %v1249_v19  ;;  %v1337_v2 = vld [vmem:[#allocation5 + $0x28] sm:$0xff] }
 0x32e   : > { %v1223_v9 = vpop.f32.mrb[49].mxu1  ;;  %v2063_v49 = vpop.eup %2062  ;;  %v1286_v22 = vmul.f32 0.5, %v1278_v21  ;;  %2080 = vtanh.f32 %v1357_v6  ;;  %1381 = vst.msk [vmem:[#allocation5 + $0x8] sm:$0xff] %vm391_vm1, %v1357_v6  ;;  %v1266_v43 = vmul.f32 0.5, %v1158_v3  ;;  %v1317_v11 = vmul.f32 0.5, %v1309_v12 }
 0x32f   : > { %v1160_v51 = vpop.f32.mrb[50].mxu0  ;;  %v1224_v15 = vpop.f32.mrb[50].mxu1  ;;  %v1279_v10 = vadd.f32 1.0, %v2063_v49  ;;  %2082 = vtanh.f32 %v1222_v13  ;;  %v1298_v47 = vmul.f32 0.5, %v1190_v39  ;;  %v1435_v13 = vld [vmem:[#allocation6 + $0x8] sm:$0xff] }
 0x330   : > { %v2065_v58 = vpop.eup %2064  ;;  %v1161_v61 = vadd.f32 %v1160_v51, %v2610_v62  ;;  %v1162_v17 = vpop.f32.mrb[51].mxu0  ;;  %v1342_v27 = vmul.f32 %v1334_v54, %v1286_v22  ;;  %v1225_v30 = vadd.f32 %v1224_v15, %v2632_v35  ;;  %2084 = vtanh.f32 %v1266_v43  ;;  %v1459_v51 = vld [vmem:[#allocation7 + $0x8] sm:$0xff] }
 0x331   : > { %v1226_v8 = vpop.f32.mrb[51].mxu1  ;;  %v2067_v23 = vpop.eup %2066  ;;  %v1287_v28 = vmul.f32 0.5, %v1279_v10  ;;  %v1310_v35 = vadd.f32 1.0, %v2061_v5  ;;  %v1311_v21 = vadd.f32 1.0, %v2065_v58 }
 0x332   : > { %v2069_v55 = vpop.eup %2068  ;;  %v1267_v31 = vmul.f32 0.5, %v1161_v61  ;;  %v1358_v33 = vadd.f32 %v1350_v45, %v1342_v27  ;;  %2086 = vtanh.f32 %v1225_v30  ;;  %v832_v0 = vpop.permute.xlu1 %831  ;;  %v1250_v29 = vadd.f32 1.0, %v2067_v23  ;;  %v1434_v45 = vld [vmem:[#allocation6] sm:$0xff] }
 0x333   : > { %v2071_v52 = vpop.eup %2070  ;;  %v1352_v62 = vmul.f32 %v2069_v55, %v1256_v26  ;;  %v1343_v59 = vmul.f32 %v1335_v7, %v1287_v28  ;;  %v1193_v38 = vadd.f32 %v2638_v44, %v832_v0  ;;  %v1318_v24 = vmul.f32 0.5, %v1310_v35  ;;  %v1436_v55 = vld [vmem:[#allocation6 + $0x10] sm:$0xff]  ;;  %v1437_v35 = vld [vmem:[#allocation6 + $0x18] sm:$0xff] }
 0x334   : > { %v2073_v34 = vpop.eup %2072  ;;  %2088 = vtanh.f32 %v1267_v31  ;;  %1382 = vst.msk [vmem:[#allocation5 + $0x10] sm:$0xff] %vm391_vm1, %v1358_v33  ;;  %v1251_v48 = vadd.f32 1.0, %v2071_v52  ;;  %v1258_v54 = vmul.f32 0.5, %v1250_v29 }
 0x335   : > { %v2075_v40 = vpop.eup %2074  ;;  %2090 = vtanh.f32 %v1358_v33  ;;  %v1280_v53 = vadd.f32 1.0, %v2073_v34  ;;  %v1359_v41 = vadd.f32 %v1351_v37, %v1343_v59  ;;  %v1299_v9 = vmul.f32 0.5, %v1193_v38  ;;  %v1460_v34 = vld [vmem:[#allocation7 + $0x10] sm:$0xff] }
 0x336   : > { %v2077_v56 = vpop.eup %2076  ;;  %2092 = vtanh.f32 %v1296_v63  ;;  %v1353_v14 = vmul.f32 %v2075_v40, %v1257_v36  ;;  %v1259_v20 = vmul.f32 0.5, %v1251_v48  ;;  %v1338_v63 = vld [vmem:[#allocation5 + $0x30] sm:$0xff] }
 0x337   : > { %v2079_v42 = vpop.eup %2078  ;;  %2094 = vtanh.f32 %v1297_v32  ;;  %v1288_v46 = vmul.f32 0.5, %v1280_v53  ;;  %v1281_v60 = vadd.f32 1.0, %v2077_v56  ;;  %1383 = vst.msk [vmem:[#allocation5 + $0x18] sm:$0xff] %vm391_vm1, %v1359_v41  ;;  %v1339_v32 = vld [vmem:[#allocation5 + $0x38] sm:$0xff] }
 0x338   : > { %v1372_v50 = vmul.f32 %v2079_v42, %v2659_v4  ;;  %2096 = vtanh.f32 %v1359_v41  ;;  %v2081_v6 = vpop.eup %2080 }
 0x339   : > { %v1344_v1 = vmul.f32 %v1336_v18, %v1288_v46  ;;  %v1289_v5 = vmul.f32 0.5, %v1281_v60  ;;  %v2083_v16 = vpop.eup %2082  ;;  %v1373_v49 = vmul.f32 %v2081_v6, %v1317_v11  ;;  %2098 = vtanh.f32 %v1298_v47 }
 0x33a   : > { %v1835_v44 = vpack.c.bf16 %v1372_v50, %v1372_v50  ;;  %v1442_v37 = vadd.f32 %v1434_v45, %v1372_v50  ;;  %v1466_v3 = vmul.f32 %v1372_v50, %v1372_v50  ;;  %v2085_v19 = vpop.eup %2084  ;;  %v1354_v15 = vmul.f32 %v2083_v16, %v1258_v54 }
 0x33b   : > { %v1360_v4 = vadd.f32 %v1352_v62, %v1344_v1  ;;  %v1345_v12 = vmul.f32 %v1337_v2, %v1289_v5  ;;  %v1388_v10 = vpack.c.bf16 %v1373_v49, %v1372_v50  ;;  %v1836_v43 = vpack.c.bf16 %v1373_v49, %v1373_v49 }
 0x33c   : > { %1411 = vst.msk [vmem:[%s2208_s9] sm:$0xf] %vm1410_vm4, %v1835_v44  ;;  %v1474_v22 = vadd.f32 %v1466_v3, %v1458_v57  ;;  %v2087_v58 = vpop.eup %2086  ;;  %v1443_v61 = vadd.f32 %v1435_v13, %v1373_v49  ;;  %v1467_v17 = vmul.f32 %v1373_v49, %v1373_v49  ;;  %v1282_v26 = vadd.f32 1.0, %v2085_v19  ;;  %v1462_v44 = vld [vmem:[#allocation7 + $0x20] sm:$0xff] }
 0x33d   : > { %1450 = vst.msk [vmem:[#allocation6] sm:$0xff] %vm391_vm1, %v1442_v37  ;;  %1384 = vst.msk [vmem:[#allocation5 + $0x20] sm:$0xff] %vm391_vm1, %v1360_v4  ;;  %2100 = vtanh.f32 %v1360_v4  ;;  %v1361_v23 = vadd.f32 %v1353_v14, %v1345_v12  ;;  %v1355_v27 = vmul.f32 %v2087_v58, %v1259_v20  ;;  %v1319_v62 = vmul.f32 0.5, %v1311_v21  ;;  %v1461_v14 = vld [vmem:[#allocation7 + $0x18] sm:$0xff]  ;;  %v1438_v21 = vld [vmem:[#allocation6 + $0x20] sm:$0xff] }
 0x33e   : > { %v2089_v8 = vpop.eup %2088  ;;  %1482 = vst.msk [vmem:[#allocation7] sm:$0xff] %vm391_vm1, %v1474_v22  ;;  %2102 = vtanh.f32 %v1299_v9  ;;  %1392 = vst.msk [vmem:[#allocation4 + $0x8] sm:$0xff] %vm391_vm1, %v1388_v10  ;;  %v1475_v30 = vadd.f32 %v1467_v17, %v1459_v51  ;;  %v1290_v25 = vmul.f32 0.5, %v1282_v26  ;;  %v1439_v37 = vld [vmem:[#allocation6 + $0x28] sm:$0xff]  ;;  %v1441_v26 = vld [vmem:[#allocation6 + $0x38] sm:$0xff] }
 0x33f   : > { %v2091_v7 = vpop.eup %2090  ;;  %1412 = vst.msk [vmem:[%s2208_s9 + $0x4] sm:$0xf] %vm1410_vm4, %v1836_v43  ;;  %v1283_v28 = vadd.f32 1.0, %v2089_v8  ;;  %2104 = vtanh.f32 %v1361_v23  ;;  %v1463_v22 = vld [vmem:[#allocation7 + $0x28] sm:$0xff]  ;;  %v1440_v43 = vld [vmem:[#allocation6 + $0x30] sm:$0xff] }
 0x340   : > { %1451 = vst.msk [vmem:[#allocation6 + $0x8] sm:$0xff] %vm391_vm1, %v1443_v61  ;;  %v2093_v31 = vpop.eup %2092  ;;  %v1374_v52 = vmul.f32 %v2091_v7, %v1318_v24  ;;  %1385 = vst.msk [vmem:[#allocation5 + $0x28] sm:$0xff] %vm391_vm1, %v1361_v23  ;;  %v1346_v53 = vmul.f32 %v1338_v63, %v1290_v25  ;;  %v1464_v23 = vld [vmem:[#allocation7 + $0x30] sm:$0xff]  ;;  %v1465_v25 = vld [vmem:[#allocation7 + $0x38] sm:$0xff] }
 0x341   : > { %v2095_v33 = vpop.eup %2094  ;;  %1483 = vst.msk [vmem:[#allocation7 + $0x8] sm:$0xff] %vm391_vm1, %v1475_v30  ;;  %v1291_v36 = vmul.f32 0.5, %v1283_v28  ;;  %v1312_v56 = vadd.f32 1.0, %v2093_v31 }
 0x342   : > { %v2097_v39 = vpop.eup %2096  ;;  %v1837_v59 = vpack.c.bf16 %v1374_v52, %v1374_v52  ;;  %v1444_v40 = vadd.f32 %v1436_v55, %v1374_v52  ;;  %v1468_v11 = vmul.f32 %v1374_v52, %v1374_v52  ;;  %v1313_v41 = vadd.f32 1.0, %v2095_v33 }
 0x343   : > { %v1375_v0 = vmul.f32 %v2097_v39, %v1319_v62  ;;  %v1347_v29 = vmul.f32 %v1339_v32, %v1291_v36  ;;  %v1362_v42 = vadd.f32 %v1354_v15, %v1346_v53  ;;  %v2099_v47 = vpop.eup %2098  ;;  %v1320_v50 = vmul.f32 0.5, %v1312_v56 }
 0x344   : > { %1413 = vst.msk [vmem:[%s2208_s9 + $0x8] sm:$0xf] %vm1410_vm4, %v1837_v59  ;;  %v1476_v18 = vadd.f32 %v1468_v11, %v1460_v34  ;;  %v1321_v1 = vmul.f32 0.5, %v1313_v41  ;;  %v1314_v54 = vadd.f32 1.0, %v2099_v47  ;;  %v1494_v34 = vld [vmem:[#allocation6] sm:$0xff] (!%p1827_p7) }
 0x345   : > { %1452 = vst.msk [vmem:[#allocation6 + $0x10] sm:$0xff] %vm391_vm1, %v1444_v40  ;;  %v1389_v38 = vpack.c.bf16 %v1375_v0, %v1374_v52  ;;  %v1838_v45 = vpack.c.bf16 %v1375_v0, %v1375_v0  ;;  %v1445_v46 = vadd.f32 %v1437_v35, %v1375_v0  ;;  %v1469_v60 = vmul.f32 %v1375_v0, %v1375_v0 }
 0x346   : > { %1484 = vst.msk [vmem:[#allocation7 + $0x10] sm:$0xff] %vm391_vm1, %v1476_v18  ;;  %2106 = vtanh.f32 %v1362_v42  ;;  %1386 = vst.msk [vmem:[#allocation5 + $0x30] sm:$0xff] %vm391_vm1, %v1362_v42  ;;  %v1363_v48 = vadd.f32 %v1355_v27, %v1347_v29  ;;  %v1322_v15 = vmul.f32 0.5, %v1314_v54  ;;  %v1502_v59 = vsel (!%p1827_p7), %vm391_vm1, %v1494_v34, 0.0 }
 0x347   : > { %1393 = vst.msk [vmem:[#allocation4 + $0x10] sm:$0xff] %vm391_vm1, %v1389_v38  ;;  %1453 = vst.msk [vmem:[#allocation6 + $0x18] sm:$0xff] %vm391_vm1, %v1445_v46  ;;  %v1477_v2 = vadd.f32 %v1469_v60, %v1461_v14  ;;  %v2101_v24 = vpop.eup %2100  ;;  %v1495_v40 = vld [vmem:[#allocation6 + $0x8] sm:$0xff] (!%p1827_p7)  ;;  %1503 = vadd.xlane.f32.xlu0 (!%p1827_p7), %v1502_v59 }
 0x348   : > { %1414 = vst.msk [vmem:[%s2208_s9 + $0xc] sm:$0xf] %vm1410_vm4, %v1838_v45  ;;  %2108 = vtanh.f32 %v1363_v48  ;;  %v2103_v57 = vpop.eup %2102  ;;  %v1376_v5 = vmul.f32 %v2101_v24, %v1320_v50  ;;  %v1505_v35 = vsel (!%p1827_p7), %vm391_vm1, %v1495_v40, 0.0  ;;  %v1536_v38 = vld [vmem:[#allocation7 + $0x8] sm:$0xff] (!%p1827_p7)  ;;  %v1535_v45 = vld [vmem:[#allocation7] sm:$0xff] (!%p1827_p7) }
 0x349   : > { %1387 = vst.msk [vmem:[#allocation5 + $0x38] sm:$0xff] %vm391_vm1, %v1363_v48  ;;  %1485 = vst.msk [vmem:[#allocation7 + $0x18] sm:$0xff] %vm391_vm1, %v1477_v2  ;;  %v2105_v6 = vpop.eup %2104  ;;  %v1315_v49 = vadd.f32 1.0, %v2103_v57  ;;  %v1546_v46 = vsel (!%p1827_p7), %vm391_vm1, %v1536_v38, 0.0  ;;  %v1543_v60 = vsel (!%p1827_p7), %vm391_vm1, %v1535_v45, 0.0 }
 0x34a   : > { %v1839_v3 = vpack.c.bf16 %v1376_v5, %v1376_v5  ;;  %v1446_v13 = vadd.f32 %v1438_v21, %v1376_v5  ;;  %v1470_v16 = vmul.f32 %v1376_v5, %v1376_v5  ;;  %v1377_v9 = vmul.f32 %v2105_v6, %v1321_v1 }
 0x34b   : > { %v1323_v61 = vmul.f32 0.5, %v1315_v49  ;;  %1506 = vadd.xlane.f32.xlu0 (!%p1827_p7), %v1505_v35 }
 0x34c   : > { %1823 = vst.msk [vmem:[%s2208_s9 + $0x10] sm:$0xf] %vm1410_vm4, %v1839_v3  ;;  %v1478_v4 = vadd.f32 %v1470_v16, %v1462_v44  ;;  %v1390_v12 = vpack.c.bf16 %v1377_v9, %v1376_v5  ;;  %v1840_v19 = vpack.c.bf16 %v1377_v9, %v1377_v9  ;;  %v1447_v20 = vadd.f32 %v1439_v37, %v1377_v9  ;;  %v1496_v62 = vld [vmem:[#allocation6 + $0x10] sm:$0xff] (!%p1827_p7) }
 0x34d   : > { %1454 = vst.msk [vmem:[#allocation6 + $0x20] sm:$0xff] %vm391_vm1, %v1446_v13  ;;  %v1471_v51 = vmul.f32 %v1377_v9, %v1377_v9  ;;  %v1508_v39 = vsel (!%p1827_p7), %vm391_vm1, %v1496_v62, 0.0  ;;  %v1537_v48 = vld [vmem:[#allocation7 + $0x10] sm:$0xff] (!%p1827_p7) }
 0x34e   : > { %1486 = vst.msk [vmem:[#allocation7 + $0x20] sm:$0xff] %vm391_vm1, %v1478_v4  ;;  %1394 = vst.msk [vmem:[#allocation4 + $0x18] sm:$0xff] %vm391_vm1, %v1390_v12  ;;  %v1497_v36 = vld [vmem:[#allocation6 + $0x18] sm:$0xff] (!%p1827_p7)  ;;  %1509 = vadd.xlane.f32.xlu1 (!%p1827_p7), %v1508_v39  ;;  %v1549_v2 = vsel (!%p1827_p7), %vm391_vm1, %v1537_v48, 0.0 }
 0x34f   : > { %1824 = vst.msk [vmem:[%s2208_s9 + $0x14] sm:$0xf] %vm1410_vm4, %v1840_v19  ;;  %v1479_v10 = vadd.f32 %v1471_v51, %v1463_v22  ;;  %v1511_v11 = vsel (!%p1827_p7), %vm391_vm1, %v1497_v36, 0.0 }
 0x350   : > { %1455 = vst.msk [vmem:[#allocation6 + $0x28] sm:$0xff] %vm391_vm1, %v1447_v20  ;;  %v2107_v58 = vpop.eup %2106  ;;  %v1538_v47 = vld [vmem:[#allocation7 + $0x18] sm:$0xff] (!%p1827_p7) }
 0x351   : > { %v1378_v17 = vmul.f32 %v2107_v58, %v1322_v15  ;;  %1487 = vst.msk [vmem:[#allocation7 + $0x28] sm:$0xff] %vm391_vm1, %v1479_v10  ;;  %v1552_v50 = vsel (!%p1827_p7), %vm391_vm1, %v1538_v47, 0.0 }
 0x352   : > { %v2109_v8 = vpop.eup %2108  ;;  %1512 = vadd.xlane.f32.xlu1 (!%p1827_p7), %v1511_v11 }
 0x353   : > { %v1841_v27 = vpack.c.bf16 %v1378_v17, %v1378_v17  ;;  %v1448_v7 = vadd.f32 %v1440_v43, %v1378_v17  ;;  %v1472_v30 = vmul.f32 %v1378_v17, %v1378_v17  ;;  %v1379_v55 = vmul.f32 %v2109_v8, %v1323_v61 }
 0x354   : > { %1493 = sbr.rel (%p1827_p7) target bundleno = 1025 (0x401), region = 78  ;;  %v1498_v56 = vld [vmem:[#allocation6 + $0x20] sm:$0xff] (!%p1827_p7) }
 0x355   : > { %1825 = vst.msk [vmem:[%s2208_s9 + $0x18] sm:$0xf] %vm1410_vm4, %v1841_v27  ;;  %v1480_v63 = vadd.f32 %v1472_v30, %v1464_v23  ;;  %v1391_v28 = vpack.c.bf16 %v1379_v55, %v1378_v17  ;;  %v1842_v31 = vpack.c.bf16 %v1379_v55, %v1379_v55  ;;  %v1449_v52 = vadd.f32 %v1441_v26, %v1379_v55  ;;  %v1539_v21 = vld [vmem:[#allocation7 + $0x20] sm:$0xff] (!%p1827_p7) }
 0x356   : > { %1456 = vst.msk [vmem:[#allocation6 + $0x30] sm:$0xff] %vm391_vm1, %v1448_v7  ;;  %v1473_v32 = vmul.f32 %v1379_v55, %v1379_v55  ;;  %v1514_v29 = vsel (!%p1827_p7), %vm391_vm1, %v1498_v56, 0.0  ;;  %v1555_v1 = vsel (!%p1827_p7), %vm391_vm1, %v1539_v21, 0.0 }
 0x357   : > { %1488 = vst.msk [vmem:[#allocation7 + $0x30] sm:$0xff] %vm391_vm1, %v1480_v63  ;;  %1395 = vst.msk [vmem:[#allocation4 + $0x20] sm:$0xff] %vm391_vm1, %v1391_v28  ;;  %v1499_v53 = vld [vmem:[#allocation6 + $0x28] sm:$0xff] (!%p1827_p7)  ;;  %1515 = vadd.xlane.f32.xlu0 (!%p1827_p7), %v1514_v29 }
 0x358   : > { %1826 = vst.msk [vmem:[%s2208_s9 + $0x1c] sm:$0xf] %vm1410_vm4, %v1842_v31  ;;  %v1481_v33 = vadd.f32 %v1473_v32, %v1465_v25  ;;  %v1517_v0 = vsel (!%p1827_p7), %vm391_vm1, %v1499_v53, 0.0  ;;  %v1540_v24 = vld [vmem:[#allocation7 + $0x28] sm:$0xff] (!%p1827_p7) }
 0x359   : > { %1457 = vst.msk [vmem:[#allocation6 + $0x38] sm:$0xff] %vm391_vm1, %v1449_v52  ;;  %1518 = vadd.xlane.f32.xlu1 (!%p1827_p7), %v1517_v0  ;;  %v1558_v57 = vsel (!%p1827_p7), %vm391_vm1, %v1540_v24, 0.0 }
 0x35a   : > { %1489 = vst.msk [vmem:[#allocation7 + $0x38] sm:$0xff] %vm391_vm1, %v1481_v33 }
 0x35d   : > { %v1500_v18 = vld [vmem:[#allocation6 + $0x30] sm:$0xff] }
 0x35e   : > { %v1520_v42 = vsel %vm391_vm1, %v1500_v18, 0.0  ;;  %v1541_v6 = vld [vmem:[#allocation7 + $0x30] sm:$0xff] }
 0x35f   : > { %1521 = vadd.xlane.f32.xlu0 %v1520_v42  ;;  %v1561_v44 = vsel %vm391_vm1, %v1541_v6, 0.0 }
 0x360   : > { %v1501_v41 = vld [vmem:[#allocation6 + $0x38] sm:$0xff] }
 0x361   : > { %v1523_v14 = vsel %vm391_vm1, %v1501_v41, 0.0  ;;  %v1542_v5 = vld [vmem:[#allocation7 + $0x38] sm:$0xff] }
 0x362   : > { %1524 = vadd.xlane.f32.xlu1 %v1523_v14  ;;  %v1564_v54 = vsel %vm391_vm1, %v1542_v5, 0.0 }
 0x363   : > { %1544 = vadd.xlane.f32.xlu0 %v1543_v60 }
 0x366   : > { %1547 = vadd.xlane.f32.xlu1 %v1546_v46 }
 0x367   : > { %1550 = vadd.xlane.f32.xlu0 %v1549_v2 }
 0x36a   : > { %1553 = vadd.xlane.f32.xlu1 %v1552_v50 }
 0x36b   : > { %1556 = vadd.xlane.f32.xlu0 %v1555_v1 }
 0x36e   : > { %1559 = vadd.xlane.f32.xlu1 %v1558_v57 }
 0x36f   : > { %1562 = vadd.xlane.f32.xlu0 %v1561_v44 }
 0x372   : > { %1565 = vadd.xlane.f32.xlu1 %v1564_v54 }
 0x3d4   : > { %v1504_v3 = vpop.xlane.xlu0 %1503 }
 0x3d5   : > { %1527 = vst.msk [vmem:[%s2808_s5] sm:$0xff] %vm1526_vm5, %v1504_v3 }
 0x3d8   : > { %v1507_v16 = vpop.xlane.xlu0 %1506 }
 0x3d9   : > { %1528 = vst.msk [vmem:[%s2808_s5 + $0x8] sm:$0xff] %vm1526_vm5, %v1507_v16 }
 0x3db   : > { %v1510_v37 = vpop.xlane.xlu1 %1509 }
 0x3dc   : > { %1529 = vst.msk [vmem:[%s2808_s5 + $0x10] sm:$0xff] %vm1526_vm5, %v1510_v37 }
 0x3df   : > { %v1513_v13 = vpop.xlane.xlu1 %1512 }
 0x3e0   : > { %1530 = vst.msk [vmem:[%s2808_s5 + $0x18] sm:$0xff] %vm1526_vm5, %v1513_v13 }
 0x3e4   : > { %v1516_v49 = vpop.xlane.xlu0 %1515 }
 0x3e5   : > { %1531 = vst.msk [vmem:[%s2808_s5 + $0x20] sm:$0xff] %vm1526_vm5, %v1516_v49 }
 0x3e6   : > { %v1519_v9 = vpop.xlane.xlu1 %1518 }
 0x3e7   : > { %1532 = vst.msk [vmem:[%s2808_s5 + $0x28] sm:$0xff] %vm1526_vm5, %v1519_v9 }
 0x3ec   : > { %v1522_v12 = vpop.xlane.xlu0 %1521 }
 0x3ed   : > { %1533 = vst.msk [vmem:[%s2808_s5 + $0x30] sm:$0xff] %vm1526_vm5, %v1522_v12 }
 0x3ef   : > { %v1525_v4 = vpop.xlane.xlu1 %1524 }
 0x3f0   : > { %1534 = vst.msk [vmem:[%s2808_s5 + $0x38] sm:$0xff] %vm1526_vm5, %v1525_v4  ;;  %v1545_v20 = vpop.xlane.xlu0 %1544 }
 0x3f1   : > { %1567 = vst.msk [vmem:[%s2809_s6] sm:$0xff] %vm1526_vm5, %v1545_v20 }
 0x3f3   : > { %v1548_v19 = vpop.xlane.xlu1 %1547 }
 0x3f4   : > { %1568 = vst.msk [vmem:[%s2809_s6 + $0x8] sm:$0xff] %vm1526_vm5, %v1548_v19  ;;  %v1551_v51 = vpop.xlane.xlu0 %1550 }
 0x3f5   : > { %1569 = vst.msk [vmem:[%s2809_s6 + $0x10] sm:$0xff] %vm1526_vm5, %v1551_v51 }
 0x3f7   : > { %v1554_v22 = vpop.xlane.xlu1 %1553 }
 0x3f8   : > { %1570 = vst.msk [vmem:[%s2809_s6 + $0x18] sm:$0xff] %vm1526_vm5, %v1554_v22  ;;  %v1557_v58 = vpop.xlane.xlu0 %1556 }
 0x3f9   : > { %1571 = vst.msk [vmem:[%s2809_s6 + $0x20] sm:$0xff] %vm1526_vm5, %v1557_v58 }
 0x3fb   : > { %v1560_v15 = vpop.xlane.xlu1 %1559 }
 0x3fc   : > { %1572 = vst.msk [vmem:[%s2809_s6 + $0x28] sm:$0xff] %vm1526_vm5, %v1560_v15  ;;  %v1563_v43 = vpop.xlane.xlu0 %1562 }
 0x3fd   : > { %1573 = vst.msk [vmem:[%s2809_s6 + $0x30] sm:$0xff] %vm1526_vm5, %v1563_v43 }
 0x3ff   : > { %v1566_v10 = vpop.xlane.xlu1 %1565 }
 0x400   : > { %1574 = vst.msk [vmem:[%s2809_s6 + $0x38] sm:$0xff] %vm1526_vm5, %v1566_v10 }
 0x401 PF: > { %s17_s23 = sadd.s32 1, %s2136_s23   ;;  %s2810_s21 = smov %s2132_s22 }
 0x402   : > { %p14_p8 = scmp.ge.s32.totalorder %s17_s23, 10   ;;  %s2811_s22 = smov %s2813_s24 }
 0x404   :  { %16 = sbr.rel (!%p14_p8) target bundleno = 2 (0x2), region = 141 }
 0x40b   :  { %1639 = vsyncmov [#allocation3] }
 0x40e   :  { %s1640_s26 = vpop.sfrf %1639 }
 0x40f   :  { %p1832_p9 = scmp.ne.s32.totalorder %s1640_s26, 0 }
 0x411   :  { %1644 = shalt.err (%p1832_p9)  }

</bundles_post_ra>
